<compile_context>
chip_gen: v7x
topology: tpu7x:2x2x1
jax: 0.10.0
libtpu: 0.0.40
codegen_flags: <defaults>
</compile_context>

<pallas_src>
import functools

import jax
import jax.numpy as jnp
from jax.experimental import pallas as pl
from jax.experimental.pallas import tpu as pltpu


def _shsa_kernel(x_ref, wqkv_ref, bqkv_ref, wproj_ref, bproj_ref, out_ref,
                 *, attn_dim, select_channels, scale):
    # x_ref: (Cs, N) block for one batch element (batch dim squeezed).
    x = x_ref[...]                                                  # (Cs, N) f32

    # --- qkv = Conv2d(Cs, 2*D + Cs, 1)  ==  (Cout, Cs) @ (Cs, N) + b ---
    qkv = jnp.dot(wqkv_ref[...], x,
                  preferred_element_type=jnp.float32) + bqkv_ref[...]  # (Cout, N)

    # Fold the softmax scale into q (D, N) rather than scaling the (N, N)
    # score matrix: 32x fewer VPU multiplies for this step.
    q = qkv[:attn_dim, :] * scale                                   # (D, N)
    k = qkv[attn_dim:2 * attn_dim, :]                               # (D, N)
    v = qkv[2 * attn_dim:, :]                                       # (Cs, N)

    # --- attention scores: s[i, j] = sum_d q[d, i] * k[d, j] -> (N, N) ---
    s = jax.lax.dot_general(q, k, (((0,), (0,)), ((), ())),
                            preferred_element_type=jnp.float32)     # (N, N)

    # --- softmax over the last (lane) axis, max-subtracted, f32 ---
    s = s - jnp.max(s, axis=-1, keepdims=True)
    e = jnp.exp(s)                                                  # (N, N)
    l = jnp.sum(e, axis=-1, keepdims=True)                          # (N, 1)
    # Reciprocal on the (N, 1) column + broadcast multiply instead of an
    # elementwise divide over the full (N, N) tile.
    a = e * pl.reciprocal(l)                                        # (N, N)

    # --- out[c, i] = sum_j v[c, j] * a[i, j]  -> (Cs, N) ---
    out = jax.lax.dot_general(v, a, (((1,), (1,)), ((), ())),
                              preferred_element_type=jnp.float32)   # (Cs, N)

    # --- proj = Conv2d(Cs, Cs, 1)  ==  (Cs, Cs) @ (Cs, N) + b ---
    y = jnp.dot(wproj_ref[...], out,
                preferred_element_type=jnp.float32) + bproj_ref[...]
    out_ref[...] = y.astype(out_ref.dtype)


def shsa(x, w_qkv, b_qkv, w_proj, b_proj, attn_dim, select_channels):
    """x: (B, Cs, H, W) f32.  Weights in PyTorch (out, in) layout (1x1 convs).

    Returns (B, Cs, H, W), matching SHSA.forward.
    """
    B, C, H, W = x.shape
    assert C == select_channels
    N = H * W
    Cout = 2 * attn_dim + select_channels
    scale = float(attn_dim) ** -0.5

    x_flat = x.reshape(B, C, N)
    b_qkv_2d = b_qkv.reshape(Cout, 1)      # broadcast over the lane (spatial) axis
    b_proj_2d = b_proj.reshape(C, 1)

    kernel = functools.partial(_shsa_kernel, attn_dim=attn_dim,
                               select_channels=select_channels, scale=scale)

    out = pl.pallas_call(
        kernel,
        out_shape=jax.ShapeDtypeStruct((B, C, N), x.dtype),
        grid_spec=pltpu.PrefetchScalarGridSpec(
            num_scalar_prefetch=0,
            grid=(B,),
            in_specs=[
                pl.BlockSpec((None, C, N), lambda b: (b, 0, 0)),   # x (batch squeezed)
                pl.BlockSpec((Cout, C),    lambda b: (0, 0)),      # qkv weight (out, in)
                pl.BlockSpec((Cout, 1),    lambda b: (0, 0)),      # qkv bias
                pl.BlockSpec((C, C),       lambda b: (0, 0)),      # proj weight (out, in)
                pl.BlockSpec((C, 1),       lambda b: (0, 0)),      # proj bias
            ],
            out_specs=pl.BlockSpec((None, C, N), lambda b: (b, 0, 0)),
        ),
        compiler_params=pltpu.CompilerParams(
            dimension_semantics=("parallel",)),
    )(x_flat, w_qkv, b_qkv_2d, w_proj, b_proj_2d)

    return out.reshape(B, C, H, W)


def _reference(x, w_qkv, b_qkv, w_proj, b_proj, attn_dim, select_channels):
    """Pure-JAX reference mirroring the PyTorch SHSA.forward."""
    B, C, H, W = x.shape
    N = H * W
    scale = float(attn_dim) ** -0.5
    x_flat = x.reshape(B, C, N)
    qkv = jnp.einsum('oc,bcn->bon', w_qkv, x_flat) + b_qkv[None, :, None]
    q = qkv[:, :attn_dim]
    k = qkv[:, attn_dim:2 * attn_dim]
    v = qkv[:, 2 * attn_dim:]
    attn = jnp.einsum('bdi,bdj->bij', q, k) * scale
    attn = jax.nn.softmax(attn, axis=-1)
    out = jnp.einsum('bcj,bij->bci', v, attn)
    y = jnp.einsum('oc,bcn->bon', w_proj, out) + b_proj[None, :, None]
    return y.reshape(B, C, H, W)


if __name__ == "__main__":
    # Module config: select_channels=4, attn_dim=8, 16x16 spatial, batch=2.
    B, Cs, H, W = 2, 4, 16, 16
    D = 8                                    # attn_dim
    Cout = 2 * D + Cs

    key = jax.random.PRNGKey(0)
    kx, kq, kbq, kp, kbp = jax.random.split(key, 5)

    x = jax.random.normal(kx, (B, Cs, H, W), dtype=jnp.float32)

    # PyTorch Conv2d 1x1 weights are (out, in, 1, 1); stored here as (out, in).
    w_qkv = jax.random.normal(kq, (Cout, Cs), dtype=jnp.float32) * 0.1   # qkv.weight
    b_qkv = jax.random.normal(kbq, (Cout,), dtype=jnp.float32) * 0.1     # qkv.bias
    w_proj = jax.random.normal(kp, (Cs, Cs), dtype=jnp.float32) * 0.1    # proj.weight
    b_proj = jax.random.normal(kbp, (Cs,), dtype=jnp.float32) * 0.1      # proj.bias

    y = shsa(x, w_qkv, b_qkv, w_proj, b_proj, D, Cs)
    jax.block_until_ready(y)

    y_ref = _reference(x, w_qkv, b_qkv, w_proj, b_proj, D, Cs)
    assert y.shape == (B, Cs, H, W)
    assert jnp.allclose(y, y_ref, atol=5e-5, rtol=1e-4), \
        float(jnp.max(jnp.abs(y - y_ref)))

    print("KERNEL_OK")
</pallas_src>

<mosaic_0001>
module attributes {stable_mosaic.version = 11 : i64} {
  func.func @_shsa_kernel(%arg0: i32, %arg1: memref<1x4x256xf32, #tpu.memory_space<vmem>>, %arg2: memref<20x4xf32, #tpu.memory_space<vmem>>, %arg3: memref<20x1xf32, #tpu.memory_space<vmem>>, %arg4: memref<4x4xf32, #tpu.memory_space<vmem>>, %arg5: memref<4x1xf32, #tpu.memory_space<vmem>>, %arg6: memref<1x4x256xf32, #tpu.memory_space<vmem>>) attributes {dimension_semantics = [#tpu.dimension_semantics<parallel>], iteration_bounds = array<i64: 2>, scalar_prefetch = 0 : i64, scratch_operands = 0 : i64, tpu.core_type = #tpu.core_type<tc>, window_params = [{transform_indices = @transform_0, window_bounds = array<i64: 1, 4, 256>}, {pipeline_mode = #tpu.pipeline_mode<synchronous>, transform_indices = @transform_1, window_bounds = array<i64: 20, 4>}, {pipeline_mode = #tpu.pipeline_mode<synchronous>, transform_indices = @transform_2, window_bounds = array<i64: 20, 1>}, {pipeline_mode = #tpu.pipeline_mode<synchronous>, transform_indices = @transform_3, window_bounds = array<i64: 4, 4>}, {pipeline_mode = #tpu.pipeline_mode<synchronous>, transform_indices = @transform_4, window_bounds = array<i64: 4, 1>}, {transform_indices = @transform_5, window_bounds = array<i64: 1, 4, 256>}]} {
    %c0 = arith.constant 0 : index
    %c0_0 = arith.constant 0 : index
    %c0_1 = arith.constant 0 : index
    %0 = vector.load %arg1[%c0, %c0_0, %c0_1] : memref<1x4x256xf32, #tpu.memory_space<vmem>>, vector<1x4x256xf32>
    %1 = vector.shape_cast %0 : vector<1x4x256xf32> to vector<4x256xf32>
    %c0_2 = arith.constant 0 : index
    %c0_3 = arith.constant 0 : index
    %2 = vector.load %arg2[%c0_2, %c0_3] : memref<20x4xf32, #tpu.memory_space<vmem>>, vector<20x4xf32>
    %cst = arith.constant dense<0.000000e+00> : vector<20x256xf32>
    %3 = tpu.matmul %2, %1, %cst {dimension_numbers = #tpu.dot_dimension_numbers<[1], [0], [0], [1], [0, 0, 1, 1], [], []>} : vector<20x4xf32>, vector<4x256xf32>, vector<20x256xf32> -> vector<20x256xf32>
    %c0_4 = arith.constant 0 : index
    %c0_5 = arith.constant 0 : index
    %4 = vector.load %arg3[%c0_4, %c0_5] : memref<20x1xf32, #tpu.memory_space<vmem>>, vector<20x1xf32>
    %5 = vector.broadcast %4 : vector<20x1xf32> to vector<20x256xf32>
    %6 = arith.addf %3, %5 : vector<20x256xf32>
    %7 = vector.extract_strided_slice %6 {offsets = [0, 0], sizes = [8, 256], strides = [1, 1]} : vector<20x256xf32> to vector<8x256xf32>
    %cst_6 = arith.constant 0.353553385 : f32
    %8 = vector.broadcast %cst_6 : f32 to vector<8x256xf32>
    %9 = arith.mulf %7, %8 : vector<8x256xf32>
    %10 = vector.extract_strided_slice %6 {offsets = [8, 0], sizes = [8, 256], strides = [1, 1]} : vector<20x256xf32> to vector<8x256xf32>
    %11 = vector.extract_strided_slice %6 {offsets = [16, 0], sizes = [4, 256], strides = [1, 1]} : vector<20x256xf32> to vector<4x256xf32>
    %cst_7 = arith.constant dense<0.000000e+00> : vector<256x256xf32>
    %12 = tpu.matmul %9, %10, %cst_7 {dimension_numbers = #tpu.dot_dimension_numbers<[0], [0], [1], [1], [0, 1, 1, 1], [], []>} : vector<8x256xf32>, vector<8x256xf32>, vector<256x256xf32> -> vector<256x256xf32>
    %cst_8 = arith.constant dense<0xFF800000> : vector<256xf32>
    %13 = vector.multi_reduction <maximumf>, %12, %cst_8 [1] : vector<256x256xf32> to vector<256xf32>
    %14 = vector.shape_cast %13 : vector<256xf32> to vector<256x1xf32>
    %15 = vector.broadcast %14 : vector<256x1xf32> to vector<256x256xf32>
    %16 = arith.subf %12, %15 : vector<256x256xf32>
    %17 = math.exp %16 : vector<256x256xf32>
    %cst_9 = arith.constant dense<0.000000e+00> : vector<256xf32>
    %18 = vector.multi_reduction <add>, %17, %cst_9 [1] : vector<256x256xf32> to vector<256xf32>
    %19 = vector.shape_cast %18 : vector<256xf32> to vector<256x1xf32>
    %20 = tpu.reciprocal %19 : vector<256x1xf32> -> vector<256x1xf32>
    %21 = vector.broadcast %20 : vector<256x1xf32> to vector<256x256xf32>
    %22 = arith.mulf %17, %21 : vector<256x256xf32>
    %cst_10 = arith.constant dense<0.000000e+00> : vector<4x256xf32>
    %23 = tpu.matmul %11, %22, %cst_10 {dimension_numbers = #tpu.dot_dimension_numbers<[1], [1], [0], [0], [0, 0, 1, 0], [], []>} : vector<4x256xf32>, vector<256x256xf32>, vector<4x256xf32> -> vector<4x256xf32>
    %c0_11 = arith.constant 0 : index
    %c0_12 = arith.constant 0 : index
    %24 = vector.load %arg4[%c0_11, %c0_12] : memref<4x4xf32, #tpu.memory_space<vmem>>, vector<4x4xf32>
    %cst_13 = arith.constant dense<0.000000e+00> : vector<4x256xf32>
    %25 = tpu.matmul %24, %23, %cst_13 {dimension_numbers = #tpu.dot_dimension_numbers<[1], [0], [0], [1], [0, 0, 1, 1], [], []>} : vector<4x4xf32>, vector<4x256xf32>, vector<4x256xf32> -> vector<4x256xf32>
    %c0_14 = arith.constant 0 : index
    %c0_15 = arith.constant 0 : index
    %26 = vector.load %arg5[%c0_14, %c0_15] : memref<4x1xf32, #tpu.memory_space<vmem>>, vector<4x1xf32>
    %27 = vector.broadcast %26 : vector<4x1xf32> to vector<4x256xf32>
    %28 = arith.addf %25, %27 : vector<4x256xf32>
    %c0_16 = arith.constant 0 : index
    %c0_17 = arith.constant 0 : index
    %c0_18 = arith.constant 0 : index
    %29 = vector.load %arg6[%c0_16, %c0_17, %c0_18] : memref<1x4x256xf32, #tpu.memory_space<vmem>>, vector<1x4x256xf32>
    %30 = vector.shape_cast %29 : vector<1x4x256xf32> to vector<4x256xf32>
    %31 = vector.shape_cast %28 : vector<4x256xf32> to vector<1x4x256xf32>
    tpu.vector_store %arg6[%c0_16, %c0_17, %c0_18], %31 {strides = array<i32>} : memref<1x4x256xf32, #tpu.memory_space<vmem>>, vector<1x4x256xf32>,
    return
  }
  func.func @transform_0(%arg0: i32) -> (i32, i32, i32) {
    %c0_i32 = arith.constant 0 : i32
    %c0_i32_0 = arith.constant 0 : i32
    %c0_i32_1 = arith.constant 0 : i32
    return %arg0, %c0_i32, %c0_i32_0 : i32, i32, i32
  }
  func.func @transform_1(%arg0: i32) -> (i32, i32) {
    %c0_i32 = arith.constant 0 : i32
    %c0_i32_0 = arith.constant 0 : i32
    %c0_i32_1 = arith.constant 0 : i32
    return %c0_i32, %c0_i32_0 : i32, i32
  }
  func.func @transform_2(%arg0: i32) -> (i32, i32) {
    %c0_i32 = arith.constant 0 : i32
    %c0_i32_0 = arith.constant 0 : i32
    %c0_i32_1 = arith.constant 0 : i32
    return %c0_i32, %c0_i32_0 : i32, i32
  }
  func.func @transform_3(%arg0: i32) -> (i32, i32) {
    %c0_i32 = arith.constant 0 : i32
    %c0_i32_0 = arith.constant 0 : i32
    %c0_i32_1 = arith.constant 0 : i32
    return %c0_i32, %c0_i32_0 : i32, i32
  }
  func.func @transform_4(%arg0: i32) -> (i32, i32) {
    %c0_i32 = arith.constant 0 : i32
    %c0_i32_0 = arith.constant 0 : i32
    %c0_i32_1 = arith.constant 0 : i32
    return %c0_i32, %c0_i32_0 : i32, i32
  }
  func.func @transform_5(%arg0: i32) -> (i32, i32, i32) {
    %c0_i32 = arith.constant 0 : i32
    %c0_i32_0 = arith.constant 0 : i32
    %c0_i32_1 = arith.constant 0 : i32
    return %arg0, %c0_i32, %c0_i32_0 : i32, i32, i32
  }
}

</mosaic_0001>

<bundles_post_ra>
// kernel: tpu_custom_call.1
= control target key start
LH: loop header
LB: loop body
LE: loop exit
PB: predicated region body
PF: predicated region fallthrough
CT: control target
= control target key end

     0   :  { %10 = vsyncpa [#allocation3], 0  ;;  %s2660_s0 = inlined_call_operand.vmem [shape: f32[2,4,256], index: 0, kind: input, shape index: {}]   ;;  %s2661_s1 = inlined_call_operand.vmem [shape: f32[20,4], index: 1, kind: input, shape index: {}]   ;;  %s2662_s2 = inlined_call_operand.vmem [shape: f32[20,1], index: 2, kind: input, shape index: {}]   ;;  %s2663_s3 = inlined_call_operand.vmem [shape: f32[4,4], index: 3, kind: input, shape index: {}]   ;;  %s2664_s4 = inlined_call_operand.vmem [shape: f32[4,1], index: 4, kind: input, shape index: {}]   ;;  %s2665_s5 = inlined_call_operand.hbm [shape: f32[2,4,256], index: 5, kind: output, shape index: {}]  }
   0x1   :  { %12 = vsyncpa [#allocation3 + $0x1], 0  ;;  %s1933_s18 = smov 0   ;;  %s1935_s19 = smov 0  }
   0x2   :  { %s1937_s20 = smov 0   ;;  %s1939_s21 = smov 0  }
   0x3 LB: > { %s1954_s22 = sadd.s32 4294967295, %s1898_s21   ;;  %s1482_s23 = sadd.s32 4294967294, %s1898_s21   ;;  %s1898_s21 = sphi %s1939_s21, %s2755_s21   ;;  %s1894_s20 = sphi %s1937_s20, %s2754_s20   ;;  %s1890_s19 = sphi %s1935_s19, %s2753_s19   ;;  %s1886_s18 = sphi %s1933_s18, %s2752_s18  }
   0x4   : > { %s1958_s24 = sadd.s32 1, %s1898_s21   ;;  %s135_s25 = sadd.s32 1, %s1894_s20 }
   0x5   : > { %s132_s26 = ssub.s32 %s1898_s21, %s1958_s24  ;;  %p145_p0 = scmp.ne.s32.totalorder %s1894_s20, %s1890_s19 }
   0x6   : > { %p133_p1 = scmp.eq.s32.totalorder %s132_s26, 0  ;;  %p146_p2 = scmp.eq.s32.totalorder %s1954_s22, 1 }
   0x7   : > { %p151_p3 = scmp.ne.s32.totalorder %s1890_s19, %s1886_s18  ;;  %p152_p4 = scmp.eq.s32.totalorder %s1482_s23, 1 }
   0x8   : > { %s1969_s27 = scalar_select %p133_p1, %s1894_s20, %s135_s25  }
   0x9   : > { %p1971_p5 = por %p146_p2, %p145_p0  ;;  %p1975_p6 = por %p152_p4, %p151_p3 }
   0xa   : > { %p1485_p7 = scmp.ge.s32.totalorder %s1898_s21, 1  ;;  %p190_p8 = scmp.lt.s32.totalorder %s1898_s21, 3 }
   0xc   : > { %p191_p9 = pnand %p1485_p7, %p190_p8 }
   0xe   : > { %194 = sbr.rel (%p191_p9) target bundleno = 1555 (0x613), region = 40 }
  0x15   : > { %p218_p10 = scmp.lt.s32.totalorder %s1954_s22, 1  ;;  %v1900_v0 = vmov 0.0   ;;  %v227_v1 = vld [vmem:[%s2662_s2] sm:$0xff]  ;;  %v1901_v2 = vmov 0   ;;  %v228_v3 = vld [vmem:[%s2662_s2 + $0x8] sm:$0xff]  ;;  %vm257_vm0 = vcmask 1043456  }
  0x16   : > { %326 = vmatprep.mubr.f32.mxu0 %v1900_v0  ;;  %572 = vmatprep.mubr.f32.mxu1 %v1900_v0  ;;  %v224_v6 = vld [vmem:[%s2661_s1] sm:$0xff]  ;;  %vm247_vm1 = vcmask 31744   ;;  %v225_v7 = vld [vmem:[%s2661_s1 + $0x8] sm:$0xff]  ;;  %vm411_vm2 = vcmask 64512   ;;  %s215_s10 = sand.u32 1, %s1890_s19   ;;  %s1535_s12 = sshll.u32 %s1954_s22, 7 }
  0x17   : > { %s219_s7 = scalar_select %p218_p10, %s1954_s22, 1  ;;  %1641 = vset.pattern.permute.xlu0 %v1901_v2 }
  0x18   : > { %232 = vperm.xlu0 %1641, %v227_v1   ;;  %s1486_s11 = sshll.u32 %s215_s10, 3  ;;  %s2618_s17 = scalar_lea.hbm %s2665_s5, %s1535_s12 }
  0x19   : > { %s1534_s8 = sshll.u32 %s219_s7, 3  ;;  %s1409_s23 = scalar_lea.sflag [#allocation3], %s215_s10 }
  0x1a   : > { %s222_s13 = scalar_lea.vmem %s2660_s0, %s1534_s8  ;;  %s1902_s22 = smov [#allocation2]  }
  0x1b   : > { %v223_v4 = vld [vmem:[%s222_s13] sm:$0xff]  ;;  %s217_s13 = scalar_lea.vmem [#allocation2], %s1486_s11  ;;  %s1840_s26 = sshll.u32 %s1902_s22, 4  ;;  %s1841_s26 = int_to_ptr.vmem [resolvable:$false] %s1840_s26 }
  0x1c   : > { %v246_v5 = vcombine.high %v223_v4, %v223_v4  ;;  %237 = vperm.xlu0 %1641, %v228_v3   ;;  %s1423_s14 = sshll.u32 %s217_s13, 4  ;;  %s1842_s30 = scalar_lea.vmem %s1841_s26, 256  ;;  %s2620_s14 = int_to_ptr.vmem [resolvable:$true] %s1423_s14 }
  0x1d   : > { %s1836_s25 = scalar_lea.vmem %s2620_s14, 128  ;;  %p1843_p0 = scmp.lt.s32.totalorder %s2620_s14, %s1841_s26 }
  0x1e   : > { %1489 = vmatprep.subr.msk.mxu0 %vm257_vm0, %v246_v5  ;;  %p1837_p11 = scmp.ne.s32.totalorder %s2620_s14, %s1836_s25  ;;  %p1844_p1 = scmp.lt.s32.totalorder %s1842_s30, %s1836_s25 }
  0x1f   : > { %1490 = vmatpush1.msk.msra.mxu0 %vm257_vm0, %v223_v4 }
  0x20   : > { %1491 = vmatmul.mubr.msk.f32.vlgmr.msra.gmra.mrb[0].mxu0 %vm247_vm1, %v224_v6  ;;  %p1838_p12 = pnand %p1837_p11, %p1971_p5  ;;  %p1845_p2 = por %p1844_p1, %p1843_p0 }
  0x21   : > { %332 = vmatprep.mubr.f32.mxu0 %v1900_v0 }
  0x22   : > { %p1839_p13 = pneg %p1838_p12 }
  0x24   : > { %1492 = vmatmul.mubr.msk.f32.gmra.mrb[2].mxu0 %vm247_vm1, %v225_v7  ;;  %p1846_p3 = pnand %p1845_p2, %p1839_p13 }
  0x25   : > { %338 = vmatprep.mubr.f32.mxu0 %v1900_v0 }
  0x97   : > { %v233_v8 = vpop.permute.xlu0 %232 }
  0x9b   : > { %v238_v14 = vpop.permute.xlu0 %237 }
  0xf3   : > { %v328_v9 = vpop.f32.mrb[0].mxu0 }
  0xf4   : > { %v330_v10 = vpop.f32.mrb[1].mxu0  ;;  %v329_v11 = vadd.f32 %v328_v9, %v233_v8 }
  0xf5   : > { %v331_v18 = vadd.f32 %v330_v10, %v233_v8 }
  0xf6   : > { %v345_v12 = vmul.f32 0.35355338, %v329_v11 }
  0xf7   : > { %v334_v13 = vpop.f32.mrb[2].mxu0  ;;  %v346_v19 = vmul.f32 0.35355338, %v331_v18 }
  0xf8   : > { %v336_v15 = vpop.f32.mrb[3].mxu0  ;;  %347 = vxpose.xlu1.b32.start.end [1/1] (short) %v345_v12, 128  ;;  %v335_v17 = vadd.f32 %v334_v13, %v238_v14 }
  0xf9   : > { %v337_v16 = vadd.f32 %v336_v15, %v238_v14 }
  0xfb   : > { %508 = vmatprep.subr.mxu1 %v337_v16 }
  0xfc   : > { %509 = vmatpush1.msra.mxu1 %v335_v17 }
 0x135   : > { %379 = vxpose.xlu1.b32.start.end [1/1] (short) %v346_v19, 128 }
 0x153   : > { %1642 = vset.pattern.permute.xlu1 %v1901_v2 }
 0x178   : > { %v363_v20 = vpop.trf.xlu1 }
 0x179   : > { %1494 = vmatmul.mubr.msk.f32.vlgmr.msra.gmra.mrb[0].mxu1 %vm411_vm2, %v363_v20 }
 0x17a   : > { %578 = vmatprep.mubr.f32.mxu1 %v1900_v0 }
 0x17c   : > { %v364_v21 = vpop.trf.xlu1 }
 0x17d   : > { %1495 = vmatmul.mubr.msk.f32.gmra.mrb[2].mxu1 %vm411_vm2, %v364_v21 }
 0x17e   : > { %584 = vmatprep.mubr.f32.mxu1 %v1900_v0 }
 0x180   : > { %v365_v22 = vpop.trf.xlu1 }
 0x181   : > { %1496 = vmatmul.mubr.msk.f32.gmra.mrb[4].mxu1 %vm411_vm2, %v365_v22 }
 0x182   : > { %590 = vmatprep.mubr.f32.mxu1 %v1900_v0 }
 0x184   : > { %v366_v23 = vpop.trf.xlu1 }
 0x185   : > { %1497 = vmatmul.mubr.msk.f32.gmra.mrb[6].mxu1 %vm411_vm2, %v366_v23 }
 0x186   : > { %596 = vmatprep.mubr.f32.mxu1 %v1900_v0 }
 0x188   : > { %v367_v24 = vpop.trf.xlu1 }
 0x189   : > { %1498 = vmatmul.mubr.msk.f32.gmra.mrb[8].mxu1 %vm411_vm2, %v367_v24 }
 0x18a   : > { %602 = vmatprep.mubr.f32.mxu1 %v1900_v0 }
 0x18c   : > { %v368_v25 = vpop.trf.xlu1 }
 0x18d   : > { %1499 = vmatmul.mubr.msk.f32.gmra.mrb[10].mxu1 %vm411_vm2, %v368_v25 }
 0x18e   : > { %608 = vmatprep.mubr.f32.mxu1 %v1900_v0 }
 0x190   : > { %v369_v26 = vpop.trf.xlu1 }
 0x191   : > { %1500 = vmatmul.mubr.msk.f32.gmra.mrb[12].mxu1 %vm411_vm2, %v369_v26 }
 0x192   : > { %614 = vmatprep.mubr.f32.mxu1 %v1900_v0 }
 0x194   : > { %v370_v27 = vpop.trf.xlu1 }
 0x195   : > { %1501 = vmatmul.mubr.msk.f32.gmra.mrb[14].mxu1 %vm411_vm2, %v370_v27 }
 0x196   : > { %620 = vmatprep.mubr.f32.mxu1 %v1900_v0 }
 0x198   : > { %v371_v28 = vpop.trf.xlu1 }
 0x199   : > { %1502 = vmatmul.mubr.msk.f32.gmra.mrb[16].mxu1 %vm411_vm2, %v371_v28 }
 0x19a   : > { %626 = vmatprep.mubr.f32.mxu1 %v1900_v0 }
 0x19c   : > { %v372_v29 = vpop.trf.xlu1 }
 0x19d   : > { %1503 = vmatmul.mubr.msk.f32.gmra.mrb[18].mxu1 %vm411_vm2, %v372_v29 }
 0x19e   : > { %632 = vmatprep.mubr.f32.mxu1 %v1900_v0 }
 0x1a0   : > { %v373_v30 = vpop.trf.xlu1 }
 0x1a1   : > { %1504 = vmatmul.mubr.msk.f32.gmra.mrb[20].mxu1 %vm411_vm2, %v373_v30 }
 0x1a2   : > { %638 = vmatprep.mubr.f32.mxu1 %v1900_v0 }
 0x1a4   : > { %v374_v31 = vpop.trf.xlu1 }
 0x1a5   : > { %1505 = vmatmul.mubr.msk.f32.gmra.mrb[22].mxu1 %vm411_vm2, %v374_v31 }
 0x1a6   : > { %644 = vmatprep.mubr.f32.mxu1 %v1900_v0 }
 0x1a8   : > { %v375_v32 = vpop.trf.xlu1 }
 0x1a9   : > { %1506 = vmatmul.mubr.msk.f32.gmra.mrb[24].mxu1 %vm411_vm2, %v375_v32 }
 0x1aa   : > { %650 = vmatprep.mubr.f32.mxu1 %v1900_v0 }
 0x1ac   : > { %v376_v33 = vpop.trf.xlu1 }
 0x1ad   : > { %1507 = vmatmul.mubr.msk.f32.gmra.mrb[26].mxu1 %vm411_vm2, %v376_v33 }
 0x1ae   : > { %656 = vmatprep.mubr.f32.mxu1 %v1900_v0 }
 0x1b0   : > { %v377_v34 = vpop.trf.xlu1 }
 0x1b1   : > { %1508 = vmatmul.mubr.msk.f32.gmra.mrb[28].mxu1 %vm411_vm2, %v377_v34 }
 0x1b2   : > { %662 = vmatprep.mubr.f32.mxu1 %v1900_v0 }
 0x1b4   : > { %v378_v35 = vpop.trf.xlu1 }
 0x1b5   : > { %1509 = vmatmul.mubr.msk.f32.gmra.mrb[30].mxu1 %vm411_vm2, %v378_v35 }
 0x1b6   : > { %668 = vmatprep.mubr.f32.mxu1 %v1900_v0 }
 0x1b8   : > { %v395_v36 = vpop.trf.xlu1 }
 0x1b9   : > { %1510 = vmatmul.mubr.msk.f32.gmra.mrb[32].mxu1 %vm411_vm2, %v395_v36 }
 0x1ba   : > { %674 = vmatprep.mubr.f32.mxu1 %v1900_v0 }
 0x1bc   : > { %v396_v37 = vpop.trf.xlu1 }
 0x1bd   : > { %1511 = vmatmul.mubr.msk.f32.gmra.mrb[34].mxu1 %vm411_vm2, %v396_v37 }
 0x1be   : > { %680 = vmatprep.mubr.f32.mxu1 %v1900_v0 }
 0x1c0   : > { %v397_v38 = vpop.trf.xlu1 }
 0x1c1   : > { %1512 = vmatmul.mubr.msk.f32.gmra.mrb[36].mxu1 %vm411_vm2, %v397_v38 }
 0x1c2   : > { %686 = vmatprep.mubr.f32.mxu1 %v1900_v0 }
 0x1c4   : > { %v398_v39 = vpop.trf.xlu1 }
 0x1c5   : > { %1513 = vmatmul.mubr.msk.f32.gmra.mrb[38].mxu1 %vm411_vm2, %v398_v39 }
 0x1c6   : > { %692 = vmatprep.mubr.f32.mxu1 %v1900_v0 }
 0x1c8   : > { %v399_v40 = vpop.trf.xlu1 }
 0x1c9   : > { %1514 = vmatmul.mubr.msk.f32.gmra.mrb[40].mxu1 %vm411_vm2, %v399_v40 }
 0x1ca   : > { %698 = vmatprep.mubr.f32.mxu1 %v1900_v0 }
 0x1cc   : > { %v400_v41 = vpop.trf.xlu1 }
 0x1cd   : > { %1515 = vmatmul.mubr.msk.f32.gmra.mrb[42].mxu1 %vm411_vm2, %v400_v41 }
 0x1ce   : > { %704 = vmatprep.mubr.f32.mxu1 %v1900_v0 }
 0x1d0   : > { %v401_v42 = vpop.trf.xlu1 }
 0x1d1   : > { %1516 = vmatmul.mubr.msk.f32.gmra.mrb[44].mxu1 %vm411_vm2, %v401_v42 }
 0x1d2   : > { %710 = vmatprep.mubr.f32.mxu1 %v1900_v0 }
 0x1d4   : > { %v402_v43 = vpop.trf.xlu1 }
 0x1d5   : > { %1517 = vmatmul.mubr.msk.f32.gmra.mrb[46].mxu1 %vm411_vm2, %v402_v43 }
 0x1d6   : > { %716 = vmatprep.mubr.f32.mxu1 %v1900_v0 }
 0x1d8   : > { %v403_v44 = vpop.trf.xlu1 }
 0x1d9   : > { %1518 = vmatmul.mubr.msk.f32.gmra.mrb[48].mxu1 %vm411_vm2, %v403_v44 }
 0x1da   : > { %722 = vmatprep.mubr.f32.mxu1 %v1900_v0 }
 0x1dc   : > { %v404_v45 = vpop.trf.xlu1 }
 0x1dd   : > { %1519 = vmatmul.mubr.msk.f32.gmra.mrb[50].mxu1 %vm411_vm2, %v404_v45 }
 0x1de   : > { %728 = vmatprep.mubr.f32.mxu1 %v1900_v0 }
 0x1e0   : > { %v405_v46 = vpop.trf.xlu1 }
 0x1e1   : > { %1520 = vmatmul.mubr.msk.f32.gmra.mrb[52].mxu1 %vm411_vm2, %v405_v46 }
 0x1e2   : > { %734 = vmatprep.mubr.f32.mxu1 %v1900_v0 }
 0x1e4   : > { %v406_v47 = vpop.trf.xlu1 }
 0x1e5   : > { %1521 = vmatmul.mubr.msk.f32.gmra.mrb[54].mxu1 %vm411_vm2, %v406_v47 }
 0x1e6   : > { %740 = vmatprep.mubr.f32.mxu1 %v1900_v0 }
 0x1e8   : > { %v407_v48 = vpop.trf.xlu1 }
 0x1e9   : > { %1522 = vmatmul.mubr.msk.f32.gmra.mrb[56].mxu1 %vm411_vm2, %v407_v48 }
 0x1ea   : > { %746 = vmatprep.mubr.f32.mxu1 %v1900_v0 }
 0x1ec   : > { %v408_v49 = vpop.trf.xlu1 }
 0x1ed   : > { %1523 = vmatmul.mubr.msk.f32.gmra.mrb[58].mxu1 %vm411_vm2, %v408_v49 }
 0x1ee   : > { %752 = vmatprep.mubr.f32.mxu1 %v1900_v0 }
 0x1f0   : > { %v409_v50 = vpop.trf.xlu1 }
 0x1f1   : > { %1524 = vmatmul.mubr.msk.f32.gmra.mrb[60].mxu1 %vm411_vm2, %v409_v50 }
 0x1f2   : > { %758 = vmatprep.mubr.f32.mxu1 %v1900_v0 }
 0x1f4   : > { %v410_v51 = vpop.trf.xlu1 }
 0x1f5   : > { %1525 = vmatmul.mubr.msk.f32.gmra.mrb[62].mxu1 %vm411_vm2, %v410_v51 }
 0x1f6   : > { %1396 = vmatprep.mubr.f32.mxu1 %v1900_v0 }
 0x24c   : > { %v2070_v52 = vpop.f32.mrb[0].mxu1 }
 0x24d   : > { %v2072_v53 = vpop.f32.mrb[1].mxu1 }
 0x24e   : > { %v765_v54 = vmax.f32 %v2070_v52, %v2072_v53 }
 0x250   : > { %766 = vmax.xlane.f32.xlu0 %v765_v54  ;;  %v2076_v55 = vpop.f32.mrb[2].mxu1 }
 0x251   : > { %v2078_v56 = vpop.f32.mrb[3].mxu1 }
 0x252   : > { %v768_v57 = vmax.f32 %v2076_v55, %v2078_v56 }
 0x254   : > { %769 = vmax.xlane.f32.xlu0 %v768_v57  ;;  %v2082_v58 = vpop.f32.mrb[4].mxu1 }
 0x255   : > { %v2084_v59 = vpop.f32.mrb[5].mxu1 }
 0x256   : > { %v771_v60 = vmax.f32 %v2082_v58, %v2084_v59 }
 0x258   : > { %772 = vmax.xlane.f32.xlu0 %v771_v60  ;;  %v2088_v61 = vpop.f32.mrb[6].mxu1 }
 0x259   : > { %v2090_v62 = vpop.f32.mrb[7].mxu1 }
 0x25a   : > { %v774_v63 = vmax.f32 %v2088_v61, %v2090_v62 }
 0x25c   : > { %775 = vmax.xlane.f32.xlu0 %v774_v63  ;;  %v2094_v0 = vpop.f32.mrb[8].mxu1 }
 0x25d   : > { %v2096_v1 = vpop.f32.mrb[9].mxu1 }
 0x25e   : > { %v777_v2 = vmax.f32 %v2094_v0, %v2096_v1 }
 0x260   : > { %778 = vmax.xlane.f32.xlu0 %v777_v2  ;;  %v2100_v3 = vpop.f32.mrb[10].mxu1 }
 0x261   : > { %v2102_v4 = vpop.f32.mrb[11].mxu1 }
 0x262   : > { %v780_v5 = vmax.f32 %v2100_v3, %v2102_v4 }
 0x264   : > { %781 = vmax.xlane.f32.xlu0 %v780_v5  ;;  %v2106_v6 = vpop.f32.mrb[12].mxu1 }
 0x265   : > { %v2108_v7 = vpop.f32.mrb[13].mxu1 }
 0x266   : > { %v783_v8 = vmax.f32 %v2106_v6, %v2108_v7 }
 0x268   : > { %784 = vmax.xlane.f32.xlu0 %v783_v8  ;;  %v2112_v9 = vpop.f32.mrb[14].mxu1 }
 0x269   : > { %v2114_v10 = vpop.f32.mrb[15].mxu1 }
 0x26a   : > { %v786_v11 = vmax.f32 %v2112_v9, %v2114_v10 }
 0x26c   : > { %787 = vmax.xlane.f32.xlu0 %v786_v11  ;;  %v2118_v12 = vpop.f32.mrb[16].mxu1 }
 0x26d   : > { %v2120_v13 = vpop.f32.mrb[17].mxu1 }
 0x26e   : > { %v789_v14 = vmax.f32 %v2118_v12, %v2120_v13 }
 0x270   : > { %790 = vmax.xlane.f32.xlu1 %v789_v14  ;;  %v2124_v15 = vpop.f32.mrb[18].mxu1 }
 0x271   : > { %v2126_v16 = vpop.f32.mrb[19].mxu1 }
 0x272   : > { %v792_v17 = vmax.f32 %v2124_v15, %v2126_v16 }
 0x274   : > { %793 = vmax.xlane.f32.xlu0 %v792_v17  ;;  %v2130_v18 = vpop.f32.mrb[20].mxu1 }
 0x275   : > { %v2132_v19 = vpop.f32.mrb[21].mxu1 }
 0x276   : > { %v795_v20 = vmax.f32 %v2130_v18, %v2132_v19 }
 0x278   : > { %796 = vmax.xlane.f32.xlu0 %v795_v20  ;;  %v2136_v21 = vpop.f32.mrb[22].mxu1 }
 0x279   : > { %v2138_v22 = vpop.f32.mrb[23].mxu1 }
 0x27a   : > { %v798_v23 = vmax.f32 %v2136_v21, %v2138_v22 }
 0x27c   : > { %799 = vmax.xlane.f32.xlu0 %v798_v23  ;;  %v2142_v24 = vpop.f32.mrb[24].mxu1 }
 0x27d   : > { %v2144_v25 = vpop.f32.mrb[25].mxu1 }
 0x27e   : > { %v801_v26 = vmax.f32 %v2142_v24, %v2144_v25 }
 0x280   : > { %802 = vmax.xlane.f32.xlu0 %v801_v26  ;;  %v2148_v27 = vpop.f32.mrb[26].mxu1 }
 0x281   : > { %v2150_v28 = vpop.f32.mrb[27].mxu1 }
 0x282   : > { %v804_v29 = vmax.f32 %v2148_v27, %v2150_v28 }
 0x284   : > { %805 = vmax.xlane.f32.xlu0 %v804_v29  ;;  %v2154_v30 = vpop.f32.mrb[28].mxu1 }
 0x285   : > { %v2156_v31 = vpop.f32.mrb[29].mxu1 }
 0x286   : > { %v807_v32 = vmax.f32 %v2154_v30, %v2156_v31 }
 0x288   : > { %808 = vmax.xlane.f32.xlu0 %v807_v32  ;;  %v2160_v33 = vpop.f32.mrb[30].mxu1 }
 0x289   : > { %v2162_v34 = vpop.f32.mrb[31].mxu1 }
 0x28a   : > { %v810_v35 = vmax.f32 %v2160_v33, %v2162_v34 }
 0x28c   : > { %811 = vmax.xlane.f32.xlu0 %v810_v35  ;;  %v2166_v36 = vpop.f32.mrb[32].mxu1 }
 0x28d   : > { %v2168_v37 = vpop.f32.mrb[33].mxu1 }
 0x28e   : > { %v813_v38 = vmax.f32 %v2166_v36, %v2168_v37 }
 0x290   : > { %814 = vmax.xlane.f32.xlu0 %v813_v38  ;;  %v2172_v39 = vpop.f32.mrb[34].mxu1 }
 0x291   : > { %v2174_v40 = vpop.f32.mrb[35].mxu1 }
 0x292   : > { %v816_v41 = vmax.f32 %v2172_v39, %v2174_v40 }
 0x294   : > { %817 = vmax.xlane.f32.xlu0 %v816_v41  ;;  %v2178_v42 = vpop.f32.mrb[36].mxu1 }
 0x295   : > { %v2180_v43 = vpop.f32.mrb[37].mxu1 }
 0x296   : > { %v819_v44 = vmax.f32 %v2178_v42, %v2180_v43 }
 0x298   : > { %820 = vmax.xlane.f32.xlu0 %v819_v44  ;;  %v2184_v45 = vpop.f32.mrb[38].mxu1 }
 0x299   : > { %v2186_v46 = vpop.f32.mrb[39].mxu1 }
 0x29a   : > { %v822_v47 = vmax.f32 %v2184_v45, %v2186_v46 }
 0x29c   : > { %823 = vmax.xlane.f32.xlu0 %v822_v47  ;;  %v2190_v48 = vpop.f32.mrb[40].mxu1 }
 0x29d   : > { %v2192_v49 = vpop.f32.mrb[41].mxu1 }
 0x29e   : > { %v825_v50 = vmax.f32 %v2190_v48, %v2192_v49 }
 0x2a0   : > { %826 = vmax.xlane.f32.xlu0 %v825_v50  ;;  %v2196_v51 = vpop.f32.mrb[42].mxu1 }
 0x2a1   : > { %v2198_v54 = vpop.f32.mrb[43].mxu1 }
 0x2a2   : > { %v828_v57 = vmax.f32 %v2196_v51, %v2198_v54 }
 0x2a4   : > { %829 = vmax.xlane.f32.xlu0 %v828_v57  ;;  %v2202_v60 = vpop.f32.mrb[44].mxu1 }
 0x2a5   : > { %v2204_v63 = vpop.f32.mrb[45].mxu1 }
 0x2a6   : > { %v831_v2 = vmax.f32 %v2202_v60, %v2204_v63 }
 0x2a8   : > { %832 = vmax.xlane.f32.xlu0 %v831_v2  ;;  %v2208_v5 = vpop.f32.mrb[46].mxu1 }
 0x2a9   : > { %2695 = vst [vmem:[#allocation5_spill] sm:$0xff] %v2208_v5  ;;  %v2210_v8 = vpop.f32.mrb[47].mxu1 }
 0x2aa   : > { %2696 = vst [vmem:[#allocation6_spill] sm:$0xff] %v2210_v8  ;;  %v834_v11 = vmax.f32 %v2208_v5, %v2210_v8 }
 0x2ac   : > { %835 = vmax.xlane.f32.xlu0 %v834_v11  ;;  %v2214_v14 = vpop.f32.mrb[48].mxu1 }
 0x2ad   : > { %2697 = vst [vmem:[#allocation7_spill] sm:$0xff] %v2214_v14  ;;  %v2216_v17 = vpop.f32.mrb[49].mxu1 }
 0x2ae   : > { %2698 = vst [vmem:[#allocation8_spill] sm:$0xff] %v2216_v17  ;;  %v837_v20 = vmax.f32 %v2214_v14, %v2216_v17 }
 0x2b0   : > { %838 = vmax.xlane.f32.xlu0 %v837_v20  ;;  %v2220_v23 = vpop.f32.mrb[50].mxu1 }
 0x2b1   : > { %2699 = vst [vmem:[#allocation9_spill] sm:$0xff] %v2220_v23  ;;  %v2222_v26 = vpop.f32.mrb[51].mxu1 }
 0x2b2   : > { %2700 = vst [vmem:[#allocation10_spill] sm:$0xff] %v2222_v26  ;;  %v840_v29 = vmax.f32 %v2220_v23, %v2222_v26  ;;  %v226_v23 = vld [vmem:[%s2661_s1 + $0x10] sm:$0xf] }
 0x2b3   : > { %1493 = vmatmul.mubr.msk.f32.gmra.mrb[4].mxu0 %vm247_vm1, %v226_v23 }
 0x2b4   : > { %841 = vmax.xlane.f32.xlu0 %v840_v29  ;;  %v2226_v32 = vpop.f32.mrb[52].mxu1 }
 0x2b5   : > { %2701 = vst [vmem:[#allocation11_spill] sm:$0xff] %v2226_v32  ;;  %v2228_v35 = vpop.f32.mrb[53].mxu1 }
 0x2b6   : > { %2702 = vst [vmem:[#allocation12_spill] sm:$0xff] %v2228_v35  ;;  %v843_v38 = vmax.f32 %v2226_v32, %v2228_v35 }
 0x2b8   : > { %844 = vmax.xlane.f32.xlu0 %v843_v38  ;;  %v2232_v41 = vpop.f32.mrb[54].mxu1 }
 0x2b9   : > { %2703 = vst [vmem:[#allocation13_spill] sm:$0xff] %v2232_v41  ;;  %v2234_v44 = vpop.f32.mrb[55].mxu1 }
 0x2ba   : > { %2704 = vst [vmem:[#allocation14_spill] sm:$0xff] %v2234_v44  ;;  %v846_v47 = vmax.f32 %v2232_v41, %v2234_v44 }
 0x2bc   : > { %847 = vmax.xlane.f32.xlu0 %v846_v47  ;;  %v2238_v50 = vpop.f32.mrb[56].mxu1 }
 0x2bd   : > { %2705 = vst [vmem:[#allocation15_spill] sm:$0xff] %v2238_v50  ;;  %v2240_v57 = vpop.f32.mrb[57].mxu1 }
 0x2be   : > { %2706 = vst [vmem:[#allocation16_spill] sm:$0xff] %v2240_v57  ;;  %v849_v2 = vmax.f32 %v2238_v50, %v2240_v57 }
 0x2c0   : > { %850 = vmax.xlane.f32.xlu1 %v849_v2  ;;  %v2244_v11 = vpop.f32.mrb[58].mxu1 }
 0x2c1   : > { %v2246_v20 = vpop.f32.mrb[59].mxu1 }
 0x2c4   : > { %v2250_v38 = vpop.f32.mrb[60].mxu1 }
 0x2c5   : > { %v2252_v35 = vpop.f32.mrb[61].mxu1 }
 0x2c8   : > { %v2256_v44 = vpop.f32.mrb[62].mxu1 }
 0x2c9   : > { %v2258_v41 = vpop.f32.mrb[63].mxu1 }
 0x2dd   : > { %v767_v57 = vpop.xlane.xlu0 %766 }
 0x2de   : > { %v861_v50 = vsub.f32 %v2070_v52, %v767_v57  ;;  %v862_v32 = vsub.f32 %v2072_v53, %v767_v57 }
 0x2e0   : > { %v925_v29 = vmul.f32 1.442695, %v861_v50  ;;  %v927_v26 = vmul.f32 1.442695, %v862_v32 }
 0x2e1   : > { %v770_v17 = vpop.xlane.xlu0 %769 }
 0x2e2   : > { %1644 = vpow2.f32 %v925_v29  ;;  %v863_v47 = vsub.f32 %v2076_v55, %v770_v17  ;;  %v864_v14 = vsub.f32 %v2078_v56, %v770_v17 }
 0x2e3   : > { %1646 = vpow2.f32 %v927_v26 }
 0x2e4   : > { %v929_v2 = vmul.f32 1.442695, %v863_v47  ;;  %v931_v8 = vmul.f32 1.442695, %v864_v14 }
 0x2e5   : > { %v773_v52 = vpop.xlane.xlu0 %772 }
 0x2e6   : > { %1648 = vpow2.f32 %v929_v2  ;;  %v865_v53 = vsub.f32 %v2082_v58, %v773_v52  ;;  %v866_v32 = vsub.f32 %v2084_v59, %v773_v52 }
 0x2e7   : > { %1650 = vpow2.f32 %v931_v8 }
 0x2e8   : > { %v933_v50 = vmul.f32 1.442695, %v865_v53  ;;  %v935_v57 = vmul.f32 1.442695, %v866_v32 }
 0x2e9   : > { %v776_v5 = vpop.xlane.xlu0 %775 }
 0x2ea   : > { %1652 = vpow2.f32 %v933_v50  ;;  %v867_v23 = vsub.f32 %v2088_v61, %v776_v5  ;;  %v868_v55 = vsub.f32 %v2090_v62, %v776_v5 }
 0x2eb   : > { %1654 = vpow2.f32 %v935_v57 }
 0x2ec   : > { %v2274_v56 = vpop.eup %1644  ;;  %v937_v17 = vmul.f32 1.442695, %v867_v23  ;;  %v939_v14 = vmul.f32 1.442695, %v868_v55 }
 0x2ed   : > { %v2276_v26 = vpop.eup %1646  ;;  %v779_v29 = vpop.xlane.xlu0 %778 }
 0x2ee   : > { %1656 = vpow2.f32 %v937_v17  ;;  %v869_v58 = vsub.f32 %v2094_v0, %v779_v29  ;;  %v870_v59 = vsub.f32 %v2096_v1, %v779_v29  ;;  %v1053_v8 = vadd.f32 %v2276_v26, %v2274_v56 }
 0x2ef   : > { %1658 = vpow2.f32 %v939_v14 }
 0x2f0   : > { %v2282_v61 = vpop.eup %1648  ;;  %v941_v62 = vmul.f32 1.442695, %v869_v58  ;;  %v943_v5 = vmul.f32 1.442695, %v870_v59  ;;  %1054 = vadd.xlane.f32.xlu0 %v1053_v8 }
 0x2f1   : > { %v2284_v47 = vpop.eup %1650  ;;  %v782_v2 = vpop.xlane.xlu0 %781 }
 0x2f2   : > { %1660 = vpow2.f32 %v941_v62  ;;  %v871_v52 = vsub.f32 %v2100_v3, %v782_v2  ;;  %v872_v53 = vsub.f32 %v2102_v4, %v782_v2  ;;  %v1056_v0 = vadd.f32 %v2284_v47, %v2282_v61 }
 0x2f3   : > { %1662 = vpow2.f32 %v943_v5 }
 0x2f4   : > { %v2290_v1 = vpop.eup %1652  ;;  %v945_v32 = vmul.f32 1.442695, %v871_v52  ;;  %v947_v50 = vmul.f32 1.442695, %v872_v53  ;;  %1057 = vadd.xlane.f32.xlu0 %v1056_v0 }
 0x2f5   : > { %v2292_v57 = vpop.eup %1654  ;;  %v785_v23 = vpop.xlane.xlu0 %784 }
 0x2f6   : > { %1664 = vpow2.f32 %v945_v32  ;;  %v873_v55 = vsub.f32 %v2106_v6, %v785_v23  ;;  %v874_v17 = vsub.f32 %v2108_v7, %v785_v23  ;;  %v1059_v3 = vadd.f32 %v2292_v57, %v2290_v1 }
 0x2f7   : > { %1666 = vpow2.f32 %v947_v50 }
 0x2f8   : > { %v2298_v4 = vpop.eup %1656  ;;  %v949_v14 = vmul.f32 1.442695, %v873_v55  ;;  %v951_v29 = vmul.f32 1.442695, %v874_v17  ;;  %1060 = vadd.xlane.f32.xlu0 %v1059_v3 }
 0x2f9   : > { %v2300_v58 = vpop.eup %1658  ;;  %v788_v59 = vpop.xlane.xlu0 %787 }
 0x2fa   : > { %1668 = vpow2.f32 %v949_v14  ;;  %v875_v8 = vsub.f32 %v2112_v9, %v788_v59  ;;  %v876_v62 = vsub.f32 %v2114_v10, %v788_v59  ;;  %v1062_v6 = vadd.f32 %v2300_v58, %v2298_v4 }
 0x2fb   : > { %1670 = vpow2.f32 %v951_v29 }
 0x2fc   : > { %v2306_v7 = vpop.eup %1660  ;;  %v953_v5 = vmul.f32 1.442695, %v875_v8  ;;  %v955_v2 = vmul.f32 1.442695, %v876_v62  ;;  %1063 = vadd.xlane.f32.xlu0 %v1062_v6 }
 0x2fd   : > { %v2308_v52 = vpop.eup %1662  ;;  %v791_v53 = vpop.xlane.xlu1 %790 }
 0x2fe   : > { %1672 = vpow2.f32 %v953_v5  ;;  %v877_v0 = vsub.f32 %v2118_v12, %v791_v53  ;;  %v878_v32 = vsub.f32 %v2120_v13, %v791_v53  ;;  %v1065_v9 = vadd.f32 %v2308_v52, %v2306_v7 }
 0x2ff   : > { %1674 = vpow2.f32 %v955_v2 }
 0x300   : > { %v2314_v10 = vpop.eup %1664  ;;  %v957_v50 = vmul.f32 1.442695, %v877_v0  ;;  %v959_v23 = vmul.f32 1.442695, %v878_v32  ;;  %1066 = vadd.xlane.f32.xlu0 %v1065_v9  ;;  %v2707_v0 = vmax.f32 %v2244_v11, %v2246_v20 }
 0x301   : > { %v2316_v55 = vpop.eup %1666  ;;  %v794_v17 = vpop.xlane.xlu0 %793 }
 0x302   : > { %1676 = vpow2.f32 %v957_v50  ;;  %v879_v3 = vsub.f32 %v2124_v15, %v794_v17  ;;  %v880_v14 = vsub.f32 %v2126_v16, %v794_v17  ;;  %v1068_v12 = vadd.f32 %v2316_v55, %v2314_v10 }
 0x303   : > { %1678 = vpow2.f32 %v959_v23 }
 0x304   : > { %v2322_v13 = vpop.eup %1668  ;;  %v961_v29 = vmul.f32 1.442695, %v879_v3  ;;  %v963_v59 = vmul.f32 1.442695, %v880_v14  ;;  %1069 = vadd.xlane.f32.xlu0 %v1068_v12  ;;  %v2708_v14 = vmax.f32 %v2250_v38, %v2252_v35 }
 0x305   : > { %v2324_v8 = vpop.eup %1670  ;;  %v797_v62 = vpop.xlane.xlu0 %796 }
 0x306   : > { %1680 = vpow2.f32 %v961_v29  ;;  %v881_v6 = vsub.f32 %v2130_v18, %v797_v62  ;;  %v882_v5 = vsub.f32 %v2132_v19, %v797_v62  ;;  %v1071_v15 = vadd.f32 %v2324_v8, %v2322_v13 }
 0x307   : > { %1682 = vpow2.f32 %v963_v59 }
 0x308   : > { %v2330_v16 = vpop.eup %1672  ;;  %v965_v2 = vmul.f32 1.442695, %v881_v6  ;;  %v967_v53 = vmul.f32 1.442695, %v882_v5  ;;  %1072 = vadd.xlane.f32.xlu1 %v1071_v15  ;;  %853 = vmax.xlane.f32.xlu0 %v2707_v0  ;;  %v2709_v15 = vmax.f32 %v2256_v44, %v2258_v41 }
 0x309   : > { %v2335_v32 = vpop.eup %1674  ;;  %v800_v9 = vpop.xlane.xlu0 %799 }
 0x30a   : > { %1684 = vpow2.f32 %v965_v2  ;;  %v883_v18 = vsub.f32 %v2136_v21, %v800_v9  ;;  %v884_v19 = vsub.f32 %v2138_v22, %v800_v9  ;;  %v1074_v50 = vadd.f32 %v2335_v32, %v2330_v16 }
 0x30b   : > { %1686 = vpow2.f32 %v967_v53 }
 0x30c   : > { %v2341_v23 = vpop.eup %1676  ;;  %v969_v17 = vmul.f32 1.442695, %v883_v18  ;;  %v971_v3 = vmul.f32 1.442695, %v884_v19  ;;  %1075 = vadd.xlane.f32.xlu0 %v1074_v50  ;;  %856 = vmax.xlane.f32.xlu1 %v2708_v14 }
 0x30d   : > { %v2346_v12 = vpop.eup %1678  ;;  %v803_v29 = vpop.xlane.xlu0 %802 }
 0x30e   : > { %1688 = vpow2.f32 %v969_v17  ;;  %v885_v21 = vsub.f32 %v2142_v24, %v803_v29  ;;  %v886_v22 = vsub.f32 %v2144_v25, %v803_v29  ;;  %v1077_v59 = vadd.f32 %v2346_v12, %v2341_v23 }
 0x30f   : > { %1690 = vpow2.f32 %v971_v3 }
 0x310   : > { %v2352_v62 = vpop.eup %1680  ;;  %v973_v6 = vmul.f32 1.442695, %v885_v21  ;;  %v975_v5 = vmul.f32 1.442695, %v886_v22  ;;  %859 = vmax.xlane.f32.xlu0 %v2709_v15  ;;  %1078 = vadd.xlane.f32.xlu1 %v1077_v59 }
 0x311   : > { %v2357_v2 = vpop.eup %1682  ;;  %v806_v53 = vpop.xlane.xlu0 %805 }
 0x312   : > { %1692 = vpow2.f32 %v973_v6  ;;  %v887_v24 = vsub.f32 %v2148_v27, %v806_v53  ;;  %v888_v25 = vsub.f32 %v2150_v28, %v806_v53  ;;  %v1080_v0 = vadd.f32 %v2357_v2, %v2352_v62 }
 0x313   : > { %1694 = vpow2.f32 %v975_v5 }
 0x314   : > { %v2363_v9 = vpop.eup %1684  ;;  %v977_v18 = vmul.f32 1.442695, %v887_v24  ;;  %v979_v19 = vmul.f32 1.442695, %v888_v25  ;;  %1081 = vadd.xlane.f32.xlu0 %v1080_v0 }
 0x315   : > { %v2365_v50 = vpop.eup %1686  ;;  %v809_v17 = vpop.xlane.xlu0 %808 }
 0x316   : > { %1696 = vpow2.f32 %v977_v18  ;;  %v889_v3 = vsub.f32 %v2154_v30, %v809_v17  ;;  %v890_v14 = vsub.f32 %v2156_v31, %v809_v17  ;;  %v1083_v27 = vadd.f32 %v2365_v50, %v2363_v9 }
 0x317   : > { %1698 = vpow2.f32 %v979_v19 }
 0x318   : > { %v2371_v28 = vpop.eup %1688  ;;  %v981_v29 = vmul.f32 1.442695, %v889_v3  ;;  %v983_v21 = vmul.f32 1.442695, %v890_v14  ;;  %1084 = vadd.xlane.f32.xlu1 %v1083_v27 }
 0x319   : > { %v2373_v22 = vpop.eup %1690  ;;  %v812_v59 = vpop.xlane.xlu0 %811 }
 0x31a   : > { %1700 = vpow2.f32 %v981_v29  ;;  %v891_v6 = vsub.f32 %v2160_v33, %v812_v59  ;;  %v892_v5 = vsub.f32 %v2162_v34, %v812_v59  ;;  %v1086_v30 = vadd.f32 %v2373_v22, %v2371_v28 }
 0x31b   : > { %1702 = vpow2.f32 %v983_v21 }
 0x31c   : > { %v2379_v31 = vpop.eup %1692  ;;  %v985_v15 = vmul.f32 1.442695, %v891_v6  ;;  %v987_v53 = vmul.f32 1.442695, %v892_v5  ;;  %1087 = vadd.xlane.f32.xlu0 %v1086_v30 }
 0x31d   : > { %v2381_v24 = vpop.eup %1694  ;;  %v815_v25 = vpop.xlane.xlu0 %814 }
 0x31e   : > { %1704 = vpow2.f32 %v985_v15  ;;  %v893_v0 = vsub.f32 %v2166_v36, %v815_v25  ;;  %v894_v18 = vsub.f32 %v2168_v37, %v815_v25  ;;  %v1089_v33 = vadd.f32 %v2381_v24, %v2379_v31 }
 0x31f   : > { %1706 = vpow2.f32 %v987_v53 }
 0x320   : > { %v2387_v34 = vpop.eup %1696  ;;  %v989_v19 = vmul.f32 1.442695, %v893_v0  ;;  %v991_v17 = vmul.f32 1.442695, %v894_v18  ;;  %1090 = vadd.xlane.f32.xlu1 %v1089_v33 }
 0x321   : > { %v2389_v3 = vpop.eup %1698  ;;  %v818_v14 = vpop.xlane.xlu0 %817 }
 0x322   : > { %1708 = vpow2.f32 %v989_v19  ;;  %v895_v27 = vsub.f32 %v2172_v39, %v818_v14  ;;  %v896_v29 = vsub.f32 %v2174_v40, %v818_v14  ;;  %v1092_v36 = vadd.f32 %v2389_v3, %v2387_v34 }
 0x323   : > { %1710 = vpow2.f32 %v991_v17 }
 0x324   : > { %v2395_v37 = vpop.eup %1700  ;;  %v993_v21 = vmul.f32 1.442695, %v895_v27  ;;  %v995_v59 = vmul.f32 1.442695, %v896_v29  ;;  %1093 = vadd.xlane.f32.xlu0 %v1092_v36 }
 0x325   : > { %v2397_v6 = vpop.eup %1702  ;;  %v821_v5 = vpop.xlane.xlu0 %820 }
 0x326   : > { %1712 = vpow2.f32 %v993_v21  ;;  %v897_v30 = vsub.f32 %v2178_v42, %v821_v5  ;;  %v898_v15 = vsub.f32 %v2180_v43, %v821_v5  ;;  %v1095_v39 = vadd.f32 %v2397_v6, %v2395_v37 }
 0x327   : > { %1714 = vpow2.f32 %v995_v59 }
 0x328   : > { %v2403_v40 = vpop.eup %1704  ;;  %v997_v53 = vmul.f32 1.442695, %v897_v30  ;;  %v999_v25 = vmul.f32 1.442695, %v898_v15  ;;  %1096 = vadd.xlane.f32.xlu1 %v1095_v39 }
 0x329   : > { %v2405_v0 = vpop.eup %1706  ;;  %v824_v18 = vpop.xlane.xlu0 %823 }
 0x32a   : > { %1716 = vpow2.f32 %v997_v53  ;;  %v899_v33 = vsub.f32 %v2184_v45, %v824_v18  ;;  %v900_v19 = vsub.f32 %v2186_v46, %v824_v18  ;;  %v1098_v42 = vadd.f32 %v2405_v0, %v2403_v40 }
 0x32b   : > { %1718 = vpow2.f32 %v999_v25 }
 0x32c   : > { %v2411_v43 = vpop.eup %1708  ;;  %v1001_v17 = vmul.f32 1.442695, %v899_v33  ;;  %v1003_v14 = vmul.f32 1.442695, %v900_v19  ;;  %1099 = vadd.xlane.f32.xlu0 %v1098_v42 }
 0x32d   : > { %v2413_v27 = vpop.eup %1710  ;;  %v827_v29 = vpop.xlane.xlu0 %826 }
 0x32e   : > { %1720 = vpow2.f32 %v1001_v17  ;;  %v901_v36 = vsub.f32 %v2190_v48, %v827_v29  ;;  %v902_v21 = vsub.f32 %v2192_v49, %v827_v29  ;;  %v1101_v45 = vadd.f32 %v2413_v27, %v2411_v43 }
 0x32f   : > { %1722 = vpow2.f32 %v1003_v14 }
 0x330   : > { %v2419_v46 = vpop.eup %1712  ;;  %v1005_v59 = vmul.f32 1.442695, %v901_v36  ;;  %v1007_v5 = vmul.f32 1.442695, %v902_v21  ;;  %1102 = vadd.xlane.f32.xlu1 %v1101_v45  ;;  %v2710_v45 = vld [vmem:[#allocation5_spill] sm:$0xff] }
 0x331   : > { %v2421_v30 = vpop.eup %1714  ;;  %v830_v15 = vpop.xlane.xlu0 %829 }
 0x332   : > { %1724 = vpow2.f32 %v1005_v59  ;;  %v903_v39 = vsub.f32 %v2196_v51, %v830_v15  ;;  %v904_v53 = vsub.f32 %v2198_v54, %v830_v15  ;;  %v1104_v48 = vadd.f32 %v2421_v30, %v2419_v46 }
 0x333   : > { %1726 = vpow2.f32 %v1007_v5  ;;  %v2711_v5 = vld [vmem:[#allocation6_spill] sm:$0xff] }
 0x334   : > { %v2427_v49 = vpop.eup %1716  ;;  %v1009_v25 = vmul.f32 1.442695, %v903_v39  ;;  %v1011_v18 = vmul.f32 1.442695, %v904_v53  ;;  %1105 = vadd.xlane.f32.xlu0 %v1104_v48 }
 0x335   : > { %v2429_v33 = vpop.eup %1718  ;;  %v833_v19 = vpop.xlane.xlu0 %832 }
 0x336   : > { %1728 = vpow2.f32 %v1009_v25  ;;  %v905_v42 = vsub.f32 %v2202_v60, %v833_v19  ;;  %v906_v17 = vsub.f32 %v2204_v63, %v833_v19  ;;  %v1107_v51 = vadd.f32 %v2429_v33, %v2427_v49 }
 0x337   : > { %1730 = vpow2.f32 %v1011_v18  ;;  %v2714_v18 = vld [vmem:[#allocation7_spill] sm:$0xff] }
 0x338   : > { %v2435_v54 = vpop.eup %1720  ;;  %v1013_v14 = vmul.f32 1.442695, %v905_v42  ;;  %v1015_v29 = vmul.f32 1.442695, %v906_v17  ;;  %1108 = vadd.xlane.f32.xlu1 %v1107_v51  ;;  %v2715_v42 = vld [vmem:[#allocation8_spill] sm:$0xff] }
 0x339   : > { %v2437_v36 = vpop.eup %1722  ;;  %v836_v21 = vpop.xlane.xlu0 %835 }
 0x33a   : > { %1732 = vpow2.f32 %v1013_v14  ;;  %v907_v59 = vsub.f32 %v2710_v45, %v836_v21  ;;  %v908_v15 = vsub.f32 %v2711_v5, %v836_v21  ;;  %v1110_v60 = vadd.f32 %v2437_v36, %v2435_v54  ;;  %v2718_v5 = vld [vmem:[#allocation9_spill] sm:$0xff] }
 0x33b   : > { %1734 = vpow2.f32 %v1015_v29 }
 0x33c   : > { %v2443_v63 = vpop.eup %1724  ;;  %v1017_v39 = vmul.f32 1.442695, %v907_v59  ;;  %v1019_v53 = vmul.f32 1.442695, %v908_v15  ;;  %1111 = vadd.xlane.f32.xlu0 %v1110_v60  ;;  %v2719_v60 = vld [vmem:[#allocation10_spill] sm:$0xff] }
 0x33d   : > { %2712 = vst [vmem:[#allocation5_spill] sm:$0xff] %v2443_v63  ;;  %v2445_v48 = vpop.eup %1726  ;;  %v839_v25 = vpop.xlane.xlu0 %838 }
 0x33e   : > { %2713 = vst [vmem:[#allocation6_spill] sm:$0xff] %v2445_v48  ;;  %1736 = vpow2.f32 %v1017_v39  ;;  %v909_v19 = vsub.f32 %v2714_v18, %v839_v25  ;;  %v910_v17 = vsub.f32 %v2715_v42, %v839_v25  ;;  %v1113_v51 = vadd.f32 %v2445_v48, %v2443_v63 }
 0x33f   : > { %1738 = vpow2.f32 %v1019_v53 }
 0x340   : > { %v2451_v14 = vpop.eup %1728  ;;  %v1021_v29 = vmul.f32 1.442695, %v909_v19  ;;  %v1023_v21 = vmul.f32 1.442695, %v910_v17  ;;  %1114 = vadd.xlane.f32.xlu1 %v1113_v51  ;;  %v2722_v51 = vld [vmem:[#allocation11_spill] sm:$0xff] }
 0x341   : > { %2716 = vst [vmem:[#allocation7_spill] sm:$0xff] %v2451_v14  ;;  %v2453_v45 = vpop.eup %1730  ;;  %v842_v59 = vpop.xlane.xlu0 %841 }
 0x342   : > { %2717 = vst [vmem:[#allocation8_spill] sm:$0xff] %v2453_v45  ;;  %1740 = vpow2.f32 %v1021_v29  ;;  %v911_v15 = vsub.f32 %v2718_v5, %v842_v59  ;;  %v912_v39 = vsub.f32 %v2719_v60, %v842_v59  ;;  %v1116_v25 = vadd.f32 %v2453_v45, %v2451_v14  ;;  %v2723_v29 = vld [vmem:[#allocation12_spill] sm:$0xff] }
 0x343   : > { %1742 = vpow2.f32 %v1023_v21 }
 0x344   : > { %v2459_v18 = vpop.eup %1732  ;;  %v1025_v53 = vmul.f32 1.442695, %v911_v15  ;;  %v1027_v42 = vmul.f32 1.442695, %v912_v39  ;;  %1117 = vadd.xlane.f32.xlu0 %v1116_v25  ;;  %v2724_v25 = vld [vmem:[#allocation13_spill] sm:$0xff] }
 0x345   : > { %2720 = vst [vmem:[#allocation9_spill] sm:$0xff] %v2459_v18  ;;  %v2461_v19 = vpop.eup %1734  ;;  %v845_v17 = vpop.xlane.xlu0 %844 }
 0x346   : > { %2721 = vst [vmem:[#allocation10_spill] sm:$0xff] %v2461_v19  ;;  %1744 = vpow2.f32 %v1025_v53  ;;  %v913_v63 = vsub.f32 %v2722_v51, %v845_v17  ;;  %v914_v48 = vsub.f32 %v2723_v29, %v845_v17  ;;  %v1119_v59 = vadd.f32 %v2461_v19, %v2459_v18  ;;  %v2725_v53 = vld [vmem:[#allocation14_spill] sm:$0xff] }
 0x347   : > { %1746 = vpow2.f32 %v1027_v42 }
 0x348   : > { %v2467_v5 = vpop.eup %1736  ;;  %v1029_v21 = vmul.f32 1.442695, %v913_v63  ;;  %v1031_v60 = vmul.f32 1.442695, %v914_v48  ;;  %1120 = vadd.xlane.f32.xlu1 %v1119_v59  ;;  %v2727_v59 = vld [vmem:[#allocation15_spill] sm:$0xff] }
 0x349   : > { %v2469_v15 = vpop.eup %1738  ;;  %v848_v39 = vpop.xlane.xlu0 %847 }
 0x34a   : > { %1748 = vpow2.f32 %v1029_v21  ;;  %v915_v14 = vsub.f32 %v2724_v25, %v848_v39  ;;  %v916_v45 = vsub.f32 %v2725_v53, %v848_v39  ;;  %v1122_v17 = vadd.f32 %v2469_v15, %v2467_v5  ;;  %v2728_v21 = vld [vmem:[#allocation16_spill] sm:$0xff] }
 0x34b   : > { %1750 = vpow2.f32 %v1031_v60 }
 0x34c   : > { %v2475_v51 = vpop.eup %1740  ;;  %v1033_v42 = vmul.f32 1.442695, %v915_v14  ;;  %v1035_v29 = vmul.f32 1.442695, %v916_v45  ;;  %1123 = vadd.xlane.f32.xlu0 %v1122_v17 }
 0x34d   : > { %2726 = vst [vmem:[#allocation11_spill] sm:$0xff] %v2475_v51  ;;  %v2477_v63 = vpop.eup %1742  ;;  %v851_v48 = vpop.xlane.xlu1 %850 }
 0x34e   : > { %1752 = vpow2.f32 %v1033_v42  ;;  %v917_v18 = vsub.f32 %v2727_v59, %v851_v48  ;;  %v918_v19 = vsub.f32 %v2728_v21, %v851_v48  ;;  %v1125_v39 = vadd.f32 %v2477_v63, %v2475_v51 }
 0x34f   : > { %1754 = vpow2.f32 %v1035_v29 }
 0x350   : > { %v2483_v25 = vpop.eup %1744  ;;  %v1037_v60 = vmul.f32 1.442695, %v917_v18  ;;  %v1039_v53 = vmul.f32 1.442695, %v918_v19  ;;  %1126 = vadd.xlane.f32.xlu1 %v1125_v39 }
 0x351   : > { %2729 = vst [vmem:[#allocation12_spill] sm:$0xff] %v2483_v25  ;;  %v2485_v14 = vpop.eup %1746 }
 0x352   : > { %2730 = vst [vmem:[#allocation13_spill] sm:$0xff] %v2485_v14  ;;  %1756 = vpow2.f32 %v1037_v60  ;;  %v1128_v45 = vadd.f32 %v2485_v14, %v2483_v25 }
 0x353   : > { %1758 = vpow2.f32 %v1039_v53 }
 0x354   : > { %v2489_v17 = vpop.eup %1748  ;;  %1129 = vadd.xlane.f32.xlu0 %v1128_v45 }
 0x355   : > { %2731 = vst [vmem:[#allocation14_spill] sm:$0xff] %v2489_v17  ;;  %v2491_v42 = vpop.eup %1750 }
 0x356   : > { %2732 = vst [vmem:[#allocation15_spill] sm:$0xff] %v2491_v42  ;;  %v1131_v29 = vadd.f32 %v2491_v42, %v2489_v17 }
 0x358   : > { %v2495_v48 = vpop.eup %1752  ;;  %1132 = vadd.xlane.f32.xlu1 %v1131_v29 }
 0x359   : > { %2733 = vst [vmem:[#allocation16_spill] sm:$0xff] %v2495_v48  ;;  %v2497_v18 = vpop.eup %1754 }
 0x35a   : > { %2734 = vst [vmem:[#allocation17_spill] sm:$0xff] %v2497_v18  ;;  %v1134_v19 = vadd.f32 %v2497_v18, %v2495_v48 }
 0x35c   : > { %v2501_v59 = vpop.eup %1756  ;;  %1135 = vadd.xlane.f32.xlu0 %v1134_v19 }
 0x35d   : > { %2735 = vst [vmem:[#allocation18_spill] sm:$0xff] %v2501_v59  ;;  %v2503_v21 = vpop.eup %1758 }
 0x35e   : > { %2736 = vst [vmem:[#allocation19_spill] sm:$0xff] %v2503_v21  ;;  %v1137_v39 = vadd.f32 %v2503_v21, %v2501_v59 }
 0x360   : > { %1138 = vadd.xlane.f32.xlu1 %v1137_v39 }
 0x37d   : > { %v1055_v60 = vpop.xlane.xlu0 %1054 }
 0x37e   : > { %1760 = vrcp.f32 %v1055_v60 }
 0x381   : > { %v1058_v53 = vpop.xlane.xlu0 %1057 }
 0x382   : > { %1762 = vrcp.f32 %v1058_v53 }
 0x385   : > { %v1061_v45 = vpop.xlane.xlu0 %1060 }
 0x386   : > { %1764 = vrcp.f32 %v1061_v45 }
 0x388   : > { %v1761_v17 = vpop.eup %1760 }
 0x389   : > { %v1064_v29 = vpop.xlane.xlu0 %1063  ;;  %v1182_v18 = vmul.f32 %v1761_v17, %v2276_v26  ;;  %v1181_v51 = vmul.f32 %v1761_v17, %v2274_v56 }
 0x38a   : > { %1766 = vrcp.f32 %v1064_v29 }
 0x38c   : > { %v1763_v42 = vpop.eup %1762 }
 0x38d   : > { %v1067_v48 = vpop.xlane.xlu0 %1066  ;;  %v1184_v19 = vmul.f32 %v1763_v42, %v2284_v47  ;;  %v1183_v59 = vmul.f32 %v1763_v42, %v2282_v61 }
 0x38e   : > { %1768 = vrcp.f32 %v1067_v48 }
 0x38f   : > { %v1536_v39 = vpack.c.bf16 %v1184_v19, %v1182_v18  ;;  %v1538_v21 = vpack.c.bf16 %v1183_v59, %v1181_v51 }
 0x390   : > { %v1765_v53 = vpop.eup %1764 }
 0x391   : > { %1537 = vmatprep.subr.bf16.mxu0 %v1536_v39  ;;  %v1070_v60 = vpop.xlane.xlu0 %1069  ;;  %v1186_v14 = vmul.f32 %v1765_v53, %v2292_v57  ;;  %v1185_v47 = vmul.f32 %v1765_v53, %v2290_v1 }
 0x392   : > { %1770 = vrcp.f32 %v1070_v60  ;;  %1539 = vmatpush1.bf16.xpose.msra.mxu0 %v1538_v21 }
 0x394   : > { %v1767_v45 = vpop.eup %1766 }
 0x395   : > { %v854_v29 = vpop.xlane.xlu0 %853  ;;  %v1073_v25 = vpop.xlane.xlu1 %1072  ;;  %v1188_v26 = vmul.f32 %v1767_v45, %v2300_v58  ;;  %v1187_v56 = vmul.f32 %v1767_v45, %v2298_v4 }
 0x396   : > { %v919_v61 = vsub.f32 %v2244_v11, %v854_v29  ;;  %v920_v51 = vsub.f32 %v2246_v20, %v854_v29  ;;  %1772 = vrcp.f32 %v1073_v25 }
 0x397   : > { %v1540_v17 = vpack.c.bf16 %v1188_v26, %v1186_v14  ;;  %v1542_v42 = vpack.c.bf16 %v1187_v56, %v1185_v47 }
 0x398   : > { %v1041_v48 = vmul.f32 1.442695, %v919_v61  ;;  %v1043_v18 = vmul.f32 1.442695, %v920_v51  ;;  %v1769_v19 = vpop.eup %1768 }
 0x399   : > { %1541 = vmatprep.subr.bf16.mxu0 %v1540_v17  ;;  %v1076_v59 = vpop.xlane.xlu0 %1075  ;;  %v857_v21 = vpop.xlane.xlu1 %856  ;;  %v1190_v14 = vmul.f32 %v1769_v19, %v2308_v52  ;;  %v1189_v39 = vmul.f32 %v1769_v19, %v2306_v7 }
 0x39a   : > { %1774 = vpow2.f32 %v1041_v48  ;;  %v921_v57 = vsub.f32 %v2250_v38, %v857_v21  ;;  %v922_v1 = vsub.f32 %v2252_v35, %v857_v21  ;;  %1543 = vmatpush1.bf16.xpose.msra.mxu0 %v1542_v42 }
 0x39b   : > { %1776 = vpow2.f32 %v1043_v18 }
 0x39c   : > { %v1771_v4 = vpop.eup %1770  ;;  %1778 = vrcp.f32 %v1076_v59  ;;  %v1045_v11 = vmul.f32 1.442695, %v921_v57  ;;  %v1047_v20 = vmul.f32 1.442695, %v922_v1 }
 0x39d   : > { %v860_v58 = vpop.xlane.xlu0 %859  ;;  %v1192_v25 = vmul.f32 %v1771_v4, %v2316_v55  ;;  %v1191_v60 = vmul.f32 %v1771_v4, %v2314_v10  ;;  %v1079_v53 = vpop.xlane.xlu1 %1078 }
 0x39e   : > { %1780 = vpow2.f32 %v1045_v11  ;;  %v923_v38 = vsub.f32 %v2256_v44, %v860_v58  ;;  %v924_v35 = vsub.f32 %v2258_v41, %v860_v58 }
 0x39f   : > { %1782 = vpow2.f32 %v1047_v20  ;;  %v1544_v45 = vpack.c.bf16 %v1192_v25, %v1190_v14  ;;  %v1546_v29 = vpack.c.bf16 %v1191_v60, %v1189_v39 }
 0x3a0   : > { %v1049_v26 = vmul.f32 1.442695, %v923_v38  ;;  %v1051_v47 = vmul.f32 1.442695, %v924_v35  ;;  %1784 = vrcp.f32 %v1079_v53  ;;  %v1773_v55 = vpop.eup %1772 }
 0x3a1   : > { %1545 = vmatprep.subr.bf16.mxu0 %v1544_v45  ;;  %v1082_v52 = vpop.xlane.xlu0 %1081  ;;  %v1194_v61 = vmul.f32 %v1773_v55, %v2324_v8  ;;  %v1193_v17 = vmul.f32 %v1773_v55, %v2322_v13 }
 0x3a2   : > { %1786 = vpow2.f32 %v1049_v26  ;;  %1547 = vmatpush1.bf16.xpose.msra.mxu0 %v1546_v29 }
 0x3a3   : > { %1788 = vpow2.f32 %v1051_v47 }
 0x3a4   : > { %v2525_v7 = vpop.eup %1774  ;;  %1790 = vrcp.f32 %v1082_v52  ;;  %v229_v52 = vld [vmem:[%s2662_s2 + $0x10] sm:$0xf] }
 0x3a5   : > { %v2527_v10 = vpop.eup %1776  ;;  %v1085_v44 = vpop.xlane.xlu1 %1084 }
 0x3a6   : > { %v1779_v41 = vpop.eup %1778  ;;  %v1140_v56 = vadd.f32 %v2527_v10, %v2525_v7  ;;  %1792 = vrcp.f32 %v1085_v44 }
 0x3a7   : > { %v1196_v51 = vmul.f32 %v1779_v41, %v2335_v32  ;;  %v1195_v42 = vmul.f32 %v1779_v41, %v2330_v16 }
 0x3a8   : > { %v2535_v48 = vpop.eup %1780  ;;  %1141 = vadd.xlane.f32.xlu0 %v1140_v56 }
 0x3a9   : > { %v2537_v18 = vpop.eup %1782  ;;  %v1088_v59 = vpop.xlane.xlu0 %1087  ;;  %v1548_v21 = vpack.c.bf16 %v1196_v51, %v1194_v61  ;;  %v1550_v19 = vpack.c.bf16 %v1195_v42, %v1193_v17  ;;  %v1317_v17 = vld [vmem:[%s2664_s4] sm:$0xf] }
 0x3aa   : > { %1794 = vrcp.f32 %v1088_v59  ;;  %v1143_v57 = vadd.f32 %v2537_v18, %v2535_v48  ;;  %v1785_v8 = vpop.eup %1784 }
 0x3ab   : > { %1549 = vmatprep.subr.bf16.mxu0 %v1548_v21  ;;  %v1198_v11 = vmul.f32 %v1785_v8, %v2346_v12  ;;  %v1197_v58 = vmul.f32 %v1785_v8, %v2341_v23 }
 0x3ac   : > { %v2541_v32 = vpop.eup %1786  ;;  %1551 = vmatpush1.bf16.xpose.msra.mxu0 %v1550_v19  ;;  %1144 = vadd.xlane.f32.xlu1 %v1143_v57 }
 0x3ad   : > { %v2543_v13 = vpop.eup %1788  ;;  %v1091_v16 = vpop.xlane.xlu1 %1090 }
 0x3ae   : > { %v1791_v1 = vpop.eup %1790  ;;  %v1146_v4 = vadd.f32 %v2543_v13, %v2541_v32  ;;  %1796 = vrcp.f32 %v1091_v16 }
 0x3af   : > { %v1200_v20 = vmul.f32 %v1791_v1, %v2357_v2  ;;  %v1199_v14 = vmul.f32 %v1791_v1, %v2352_v62 }
 0x3b0   : > { %1147 = vadd.xlane.f32.xlu0 %v1146_v4  ;;  %v1793_v38 = vpop.eup %1792 }
 0x3b1   : > { %v1094_v25 = vpop.xlane.xlu0 %1093  ;;  %v1552_v39 = vpack.c.bf16 %v1200_v20, %v1198_v11  ;;  %v1554_v60 = vpack.c.bf16 %v1199_v14, %v1197_v58  ;;  %v1202_v45 = vmul.f32 %v1793_v38, %v2365_v50  ;;  %v1201_v23 = vmul.f32 %v1793_v38, %v2363_v9  ;;  %v2573_v11 = vpop.f32.mrb[4].mxu0 }
 0x3b2   : > { %1798 = vrcp.f32 %v1094_v25  ;;  %v2575_v20 = vpop.f32.mrb[5].mxu0 }
 0x3b3   : > { %1553 = vmatprep.subr.bf16.mxu0 %v1552_v39 }
 0x3b4   : > { %v1795_v35 = vpop.eup %1794  ;;  %1555 = vmatpush1.bf16.xpose.msra.mxu0 %v1554_v60 }
 0x3b5   : > { %v1097_v53 = vpop.xlane.xlu1 %1096  ;;  %v1204_v12 = vmul.f32 %v1795_v35, %v2373_v22  ;;  %v1203_v2 = vmul.f32 %v1795_v35, %v2371_v28 }
 0x3b6   : > { %1800 = vrcp.f32 %v1097_v53 }
 0x3b7   : > { %v1556_v62 = vpack.c.bf16 %v1204_v12, %v1202_v45  ;;  %v1558_v29 = vpack.c.bf16 %v1203_v2, %v1201_v23  ;;  %v2737_v23 = vld [vmem:[#allocation6_spill] sm:$0xff] }
 0x3b8   : > { %v1797_v47 = vpop.eup %1796 }
 0x3b9   : > { %v1100_v26 = vpop.xlane.xlu0 %1099  ;;  %1557 = vmatprep.subr.bf16.mxu0 %v1556_v62  ;;  %v1206_v22 = vmul.f32 %v1797_v47, %v2381_v24  ;;  %v1205_v44 = vmul.f32 %v1797_v47, %v2379_v31  ;;  %v2740_v47 = vld [vmem:[#allocation5_spill] sm:$0xff] }
 0x3ba   : > { %1802 = vrcp.f32 %v1100_v26  ;;  %v2739_v26 = vld [vmem:[#allocation7_spill] sm:$0xff] }
 0x3bc   : > { %v1799_v55 = vpop.eup %1798  ;;  %1559 = vmatpush1.bf16.xpose.msra.mxu0 %v1558_v29  ;;  %v2738_v29 = vld [vmem:[#allocation8_spill] sm:$0xff] }
 0x3bd   : > { %v1103_v50 = vpop.xlane.xlu1 %1102  ;;  %v1208_v28 = vmul.f32 %v1799_v55, %v2389_v3  ;;  %v1207_v9 = vmul.f32 %v1799_v55, %v2387_v34  ;;  %242 = vperm.xlu1 %1642, %v229_v52  }
 0x3be   : > { %1804 = vrcp.f32 %v1103_v50 }
 0x3bf   : > { %v1560_v41 = vpack.c.bf16 %v1208_v28, %v1206_v22  ;;  %v1562_v56 = vpack.c.bf16 %v1207_v9, %v1205_v44  ;;  %v2741_v9 = vld [vmem:[#allocation10_spill] sm:$0xff] }
 0x3c0   : > { %v1801_v51 = vpop.eup %1800 }
 0x3c1   : > { %v1106_v61 = vpop.xlane.xlu0 %1105  ;;  %1561 = vmatprep.subr.bf16.mxu0 %v1560_v41  ;;  %v1210_v3 = vmul.f32 %v1801_v51, %v2397_v6  ;;  %v1209_v59 = vmul.f32 %v1801_v51, %v2395_v37 }
 0x3c2   : > { %1806 = vrcp.f32 %v1106_v61  ;;  %v2742_v61 = vld [vmem:[#allocation9_spill] sm:$0xff] }
 0x3c4   : > { %v1803_v42 = vpop.eup %1802  ;;  %1563 = vmatpush1.bf16.xpose.msra.mxu0 %v1562_v56 }
 0x3c5   : > { %v1109_v24 = vpop.xlane.xlu1 %1108  ;;  %v1212_v34 = vmul.f32 %v1803_v42, %v2405_v0  ;;  %v1211_v31 = vmul.f32 %v1803_v42, %v2403_v40 }
 0x3c6   : > { %1320 = vperm.xlu0 %1641, %v1317_v17   ;;  %1808 = vrcp.f32 %v1109_v24 }
 0x3c7   : > { %v1564_v21 = vpack.c.bf16 %v1212_v34, %v1210_v3  ;;  %v1566_v19 = vpack.c.bf16 %v1211_v31, %v1209_v59  ;;  %v2743_v59 = vld [vmem:[#allocation13_spill] sm:$0xff] }
 0x3c8   : > { %v1805_v8 = vpop.eup %1804 }
 0x3c9   : > { %v1112_v57 = vpop.xlane.xlu0 %1111  ;;  %1565 = vmatprep.subr.bf16.mxu0 %v1564_v21  ;;  %v1214_v4 = vmul.f32 %v1805_v8, %v2413_v27  ;;  %v1213_v40 = vmul.f32 %v1805_v8, %v2411_v43 }
 0x3ca   : > { %1810 = vrcp.f32 %v1112_v57 }
 0x3cc   : > { %v1807_v16 = vpop.eup %1806  ;;  %1567 = vmatpush1.bf16.xpose.msra.mxu0 %v1566_v19  ;;  %v2744_v19 = vld [vmem:[#allocation12_spill] sm:$0xff] }
 0x3cd   : > { %v1115_v1 = vpop.xlane.xlu1 %1114  ;;  %v1216_v6 = vmul.f32 %v1807_v16, %v2421_v30  ;;  %v1215_v0 = vmul.f32 %v1807_v16, %v2419_v46 }
 0x3ce   : > { %1812 = vrcp.f32 %v1115_v1 }
 0x3cf   : > { %v1568_v37 = vpack.c.bf16 %v1216_v6, %v1214_v4  ;;  %v1570_v58 = vpack.c.bf16 %v1215_v0, %v1213_v40  ;;  %v2746_v6 = vld [vmem:[#allocation15_spill] sm:$0xff]  ;;  %v2747_v40 = vld [vmem:[#allocation17_spill] sm:$0xff] }
 0x3d0   : > { %v1809_v25 = vpop.eup %1808 }
 0x3d1   : > { %v1118_v14 = vpop.xlane.xlu0 %1117  ;;  %1569 = vmatprep.subr.bf16.mxu0 %v1568_v37  ;;  %v1218_v30 = vmul.f32 %v1809_v25, %v2429_v33  ;;  %v1217_v60 = vmul.f32 %v1809_v25, %v2427_v49  ;;  %v2749_v25 = vld [vmem:[#allocation14_spill] sm:$0xff] }
 0x3d2   : > { %1814 = vrcp.f32 %v1118_v14 }
 0x3d4   : > { %v1811_v39 = vpop.eup %1810  ;;  %1571 = vmatpush1.bf16.xpose.msra.mxu0 %v1570_v58  ;;  %v2748_v58 = vld [vmem:[#allocation16_spill] sm:$0xff] }
 0x3d5   : > { %v1121_v27 = vpop.xlane.xlu1 %1120  ;;  %v1220_v46 = vmul.f32 %v1811_v39, %v2437_v36  ;;  %v1219_v43 = vmul.f32 %v1811_v39, %v2435_v54 }
 0x3d6   : > { %1816 = vrcp.f32 %v1121_v27 }
 0x3d7   : > { %v1572_v38 = vpack.c.bf16 %v1220_v46, %v1218_v30  ;;  %v1574_v35 = vpack.c.bf16 %v1219_v43, %v1217_v60 }
 0x3d8   : > { %v1813_v45 = vpop.eup %1812 }
 0x3d9   : > { %v1124_v53 = vpop.xlane.xlu0 %1123  ;;  %1573 = vmatprep.subr.bf16.mxu0 %v1572_v38  ;;  %v1222_v62 = vmul.f32 %v1813_v45, %v2737_v23  ;;  %v1221_v54 = vmul.f32 %v1813_v45, %v2740_v47 }
 0x3da   : > { %1818 = vrcp.f32 %v1124_v53 }
 0x3dc   : > { %v1815_v12 = vpop.eup %1814  ;;  %1575 = vmatpush1.bf16.xpose.msra.mxu0 %v1574_v35 }
 0x3dd   : > { %v1127_v2 = vpop.xlane.xlu1 %1126  ;;  %v1224_v33 = vmul.f32 %v1815_v12, %v2738_v29  ;;  %v1223_v36 = vmul.f32 %v1815_v12, %v2739_v26  ;;  %v2750_v12 = vld [vmem:[#allocation19_spill] sm:$0xff] }
 0x3de   : > { %1820 = vrcp.f32 %v1127_v2 }
 0x3df   : > { %v1576_v52 = vpack.c.bf16 %v1224_v33, %v1222_v62  ;;  %v1578_v49 = vpack.c.bf16 %v1223_v36, %v1221_v54  ;;  %v2751_v62 = vld [vmem:[#allocation18_spill] sm:$0xff] }
 0x3e0   : > { %v1817_v50 = vpop.eup %1816 }
 0x3e1   : > { %v1130_v55 = vpop.xlane.xlu0 %1129  ;;  %1577 = vmatprep.subr.bf16.mxu0 %v1576_v52  ;;  %v1226_v44 = vmul.f32 %v1817_v50, %v2741_v9  ;;  %v1225_v51 = vmul.f32 %v1817_v50, %v2742_v61 }
 0x3e2   : > { %1822 = vrcp.f32 %v1130_v55 }
 0x3e4   : > { %v1819_v22 = vpop.eup %1818  ;;  %1579 = vmatpush1.bf16.xpose.msra.mxu0 %v1578_v49 }
 0x3e5   : > { %v1133_v28 = vpop.xlane.xlu1 %1132  ;;  %v1228_v41 = vmul.f32 %v1819_v22, %v2469_v15  ;;  %v1227_v56 = vmul.f32 %v1819_v22, %v2467_v5  ;;  %v2745_v15 = vld [vmem:[#allocation11_spill] sm:$0xff] }
 0x3e6   : > { %1824 = vrcp.f32 %v1133_v28 }
 0x3e7   : > { %v1580_v17 = vpack.c.bf16 %v1228_v41, %v1226_v44  ;;  %v1582_v42 = vpack.c.bf16 %v1227_v56, %v1225_v51 }
 0x3e8   : > { %v1821_v3 = vpop.eup %1820 }
 0x3e9   : > { %v1136_v24 = vpop.xlane.xlu0 %1135  ;;  %1581 = vmatprep.subr.bf16.mxu0 %v1580_v17  ;;  %v1230_v31 = vmul.f32 %v1821_v3, %v2477_v63  ;;  %v1229_v8 = vmul.f32 %v1821_v3, %v2745_v15 }
 0x3ea   : > { %1826 = vrcp.f32 %v1136_v24 }
 0x3ec   : > { %v1823_v34 = vpop.eup %1822  ;;  %1583 = vmatpush1.bf16.xpose.msra.mxu0 %v1582_v42 }
 0x3ed   : > { %v1232_v21 = vmul.f32 %v1823_v34, %v2743_v59  ;;  %v1231_v57 = vmul.f32 %v1823_v34, %v2744_v19  ;;  %v1139_v30 = vpop.xlane.xlu1 %1138 }
 0x3ee   : > { %1828 = vrcp.f32 %v1139_v30 }
 0x3ef   : > { %v1584_v5 = vpack.c.bf16 %v1232_v21, %v1230_v31  ;;  %v1586_v16 = vpack.c.bf16 %v1231_v57, %v1229_v8 }
 0x3f0   : > { %v1825_v1 = vpop.eup %1824 }
 0x3f1   : > { %1585 = vmatprep.subr.bf16.mxu0 %v1584_v5  ;;  %v1234_v0 = vmul.f32 %v1825_v1, %v2746_v6  ;;  %v1233_v63 = vmul.f32 %v1825_v1, %v2749_v25 }
 0x3f4   : > { %v1827_v4 = vpop.eup %1826  ;;  %1587 = vmatpush1.bf16.xpose.msra.mxu0 %v1586_v16 }
 0x3f5   : > { %v1236_v37 = vmul.f32 %v1827_v4, %v2747_v40  ;;  %v1235_v14 = vmul.f32 %v1827_v4, %v2748_v58 }
 0x3f7   : > { %v1588_v39 = vpack.c.bf16 %v1236_v37, %v1234_v0  ;;  %v1590_v27 = vpack.c.bf16 %v1235_v14, %v1233_v63 }
 0x3f8   : > { %v1829_v35 = vpop.eup %1828 }
 0x3f9   : > { %1589 = vmatprep.subr.bf16.mxu0 %v1588_v39  ;;  %v1238_v2 = vmul.f32 %v1829_v35, %v2750_v12  ;;  %v1237_v29 = vmul.f32 %v1829_v35, %v2751_v62 }
 0x3fc   : > { %1591 = vmatpush1.bf16.xpose.msra.mxu0 %v1590_v27 }
 0x435   : > { %v1142_v46 = vpop.xlane.xlu0 %1141 }
 0x436   : > { %1830 = vrcp.f32 %v1142_v46 }
 0x439   : > { %v1145_v43 = vpop.xlane.xlu1 %1144 }
 0x43a   : > { %1832 = vrcp.f32 %v1145_v43 }
 0x43d   : > { %v1148_v60 = vpop.xlane.xlu0 %1147  ;;  %v243_v38 = vpop.permute.xlu1 %242 }
 0x43e   : > { %1834 = vrcp.f32 %v1148_v60  ;;  %v343_v53 = vadd.f32 %v2575_v20, %v243_v38 }
 0x440   : > { %v1831_v45 = vpop.eup %1830  ;;  %1309 = vmatprep.mubr.f32.mxu0 %v343_v53 }
 0x441   : > { %v1240_v23 = vmul.f32 %v1831_v45, %v2527_v10  ;;  %v1239_v33 = vmul.f32 %v1831_v45, %v2525_v7  ;;  %v341_v7 = vadd.f32 %v2573_v11, %v243_v38 }
 0x443   : > { %v1592_v26 = vpack.c.bf16 %v1240_v23, %v1238_v2  ;;  %v1594_v36 = vpack.c.bf16 %v1239_v33, %v1237_v29 }
 0x444   : > { %v1833_v47 = vpop.eup %1832 }
 0x445   : > { %1593 = vmatprep.subr.bf16.mxu0 %v1592_v26  ;;  %v1242_v52 = vmul.f32 %v1833_v47, %v2537_v18  ;;  %v1241_v49 = vmul.f32 %v1833_v47, %v2535_v48  ;;  %v1316_v18 = vld [vmem:[%s2663_s3] sm:$0xf]  ;;  %v1321_v48 = vpop.permute.xlu0 %1320 }
 0x446   : > { %1595 = vmatpush1.bf16.xpose.msra.mxu0 %v1594_v36 }
 0x448   : > { %v1835_v54 = vpop.eup %1834 }
 0x449   : > { %v1244_v20 = vmul.f32 %v1835_v54, %v2543_v13  ;;  %v1243_v55 = vmul.f32 %v1835_v54, %v2541_v32 }
 0x44b   : > { %v1596_v10 = vpack.c.bf16 %v1244_v20, %v1242_v52  ;;  %v1598_v50 = vpack.c.bf16 %v1243_v55, %v1241_v49 }
 0x44d   : > { %1597 = vmatprep.subr.bf16.mxu0 %v1596_v10 }
 0x44e   : > { %1599 = vmatpush1.bf16.xpose.msra.mxu0 %v1598_v50 }
 0x455   : > { %1310 = vmatmul.mubr.f32.vlgmr.msra.gmra.mrb[6].mxu0 %v341_v7 }
 0x528   : > { %v1311_v22 = vpop.f32.mrb[6].mxu0 }
 0x529   : > { %v1313_v28 = vpop.f32.mrb[7].mxu0 }
 0x52a   : > { %1526 = vmatprep.subr.msk.mxu1 %vm257_vm0, %v1313_v28 }
 0x52b   : > { %1527 = vmatpush1.msk.msra.mxu1 %vm257_vm0, %v1311_v22 }
 0x52c   : > { %1528 = vmatmul.mubr.msk.f32.vlgmr.msra.gmra.mrb[64].mxu1 %vm247_vm1, %v1316_v18 }
 0x5ff   : > { %v1398_v32 = vpop.f32.mrb[64].mxu1 }
 0x600   : > { %v1399_v13 = vadd.f32 %v1398_v32, %v1321_v48  ;;  %v1400_v11 = vpop.f32.mrb[65].mxu1 }
 0x601   : > { %v1401_v9 = vadd.f32 %v1400_v11, %v1321_v48 }
 0x603   : > { %v1405_v44 = vcombine.low %v1399_v13, %v1401_v9 }
 0x605   : > { %1407 = vst [vmem:[%s217_s13] sm:$0xff] %v1405_v44 }
 0x606   : > { %1849 = shalt.err (!%p1846_p3)
}
 0x607   : > { %s1850_s6 = scalar_lea.hbm %s2618_s17, 128  ;;  %s1854_s9 = scalar_lea.hbm %s2665_s5, 256 }
 0x608   : > { %p1851_p4 = scmp.ne.s32.totalorder %s2618_s17, %s1850_s6  ;;  %p1855_p9 = scmp.lt.u32.totalorder %s2618_s17, %s2665_s5 }
 0x609   : > { %p1856_p10 = scmp.lt.u32.totalorder %s1854_s9, %s1850_s6  ;;  %p1858_p12 = scmp.lt.u32.totalorder %s1850_s6, %s2618_s17 }
 0x60a   : > { %p1852_p7 = pnand %p1851_p4, %p1971_p5 }
 0x60b   : > { %p1857_p11 = por %p1856_p10, %p1855_p9 }
 0x60c   : > { %p1853_p8 = pneg %p1852_p7 }
 0x60d   : > { %p1859_p13 = por %p1858_p12, %p1857_p11 }
 0x60f   : > { %p1860_p0 = pnand %p1859_p13, %p1853_p8 }
 0x611   : > { %1863 = shalt.err (!%p1860_p0)
}
 0x612   : > { %1600 = dma.vmem_to_hbm [thread:$0]  (%p1971_p5), %s2620_s14, 128, %s2618_s17, %s1409_s23  }
 0x613 PF: > { %p1606_p1 = scmp.ge.s32.totalorder %s1898_s21, 2  ;;  %s1435_s12 = sand.u32 1, %s1886_s18  }
 0x614   : > { %s1436_s13 = scalar_lea.sflag [#allocation3], %s1435_s12 }
 0x615   : > { %p1603_p2 = pnand %p1606_p1, %p1975_p6 }
 0x617   : > { %1881 = dma.done.wait (!%p1603_p2), %s1436_s13, 128  }
 0x618   : > { %1883 = vsyncadd (!%p1603_p2), %s1436_s13, 4294967168  ;;  %p15_p3 = scmp.ge.s32.totalorder %s1958_s24, 4   ;;  %s2752_s18 = smov %s1890_s19 }
 0x619   : > { %s2753_s19 = smov %s1894_s20  ;;  %s2754_s20 = smov %s1969_s27 }
 0x61a   : > { %s2755_s21 = smov %s1958_s24  ;;  %17 = sbr.rel (!%p15_p3) target bundleno = 3 (0x3), region = 75 }
 0x621   :  { %1441 = vsyncpa [#allocation3], 1 }
 0x622   :  { %1443 = vsyncpa [#allocation3 + $0x1], 1 }

</bundles_post_ra>
